<compile_context>
chip_gen: v7x
topology: tpu7x:2x2x1
jax: 0.10.0
libtpu: 0.0.40
codegen_flags: <defaults>
</compile_context>

<pallas_src>
import jax
import jax.numpy as jnp
from jax.experimental import pallas as pl
from jax.experimental.pallas import tpu as pltpu


# --------------------------------------------------------------------------- #
# Kernel
# --------------------------------------------------------------------------- #
def _mil_kernel(x_ref, w1_ref, b1_ref, w2_ref, b2_ref, out_ref, pooled_acc):
    """One (TB bags x TN instances) block of the MIL forward.

    Grid: (bag_blocks, instance_blocks); instance axis is the reduction axis.
    """
    n_idx = pl.program_id(1)

    @pl.when(n_idx == 0)
    def _init():
        pooled_acc[...] = jnp.zeros_like(pooled_acc)

    tb, tn, d = x_ref.shape
    h_dim = w1_ref.shape[1]

    # Instance encoder: one (TB*TN, D) @ (D, H_pad) bf16 MXU matmul, f32 acc.
    # TN is a multiple of 8 (or == full N), so this merge is layout-free.
    x = x_ref[...].reshape(tb * tn, d).astype(jnp.bfloat16)
    h = jnp.dot(x, w1_ref[...], preferred_element_type=jnp.float32)
    h = jnp.maximum(h + b1_ref[...], 0.0)                     # bias + ReLU in f32

    # Partial MIL sum-pool over this instance chunk (1/N is folded into w2).
    pooled_acc[...] += jnp.sum(h.reshape(tb, tn, h_dim), axis=1)

    @pl.when(n_idx == pl.num_programs(1) - 1)
    def _finalize():
        # Batched bag classifier: (TB, H_pad) @ (H_pad, C_pad), lane-dense out.
        logits = jnp.dot(pooled_acc[...], w2_ref[...],
                         preferred_element_type=jnp.float32)
        out_ref[...] = (logits + b2_ref[...]).astype(out_ref.dtype)


# --------------------------------------------------------------------------- #
# Tiling / VMEM heuristics
# --------------------------------------------------------------------------- #
def _vmem_capacity_bytes():
    try:
        return int(pltpu.get_tpu_info().vmem_capacity_bytes)
    except Exception:
        return 128 * (1 << 20)


def _choose_blocks(B, N, D, H_pad, in_itemsize, vmem_cap):
    """Pick (TB bags, TN instances) per grid step, generation-aware."""
    small_vmem = vmem_cap <= 64 * (1 << 20)          # v7x-class TensorCore
    block_budget = (6 if small_vmem else 14) * (1 << 20)
    # Per instance-row cost: double-buffered input row + its f32 activation row.
    row_cost = 2 * D * in_itemsize + 4 * H_pad
    max_rows = max(64, (block_budget // row_cost) // 8 * 8)

    if 8 * N <= max_rows:
        # Whole bags fit: tile bags only.
        tn = N
        tb_fill = max(8, -(-512 // N))               # fill the MXU M dimension
        tb_cap = max(8, max_rows // N)               # VMEM cap
        tb = min(tb_fill, tb_cap)
        if B > 8:
            # Keep enough bag-steps for the pipeline to overlap the bag DMA
            # (and for both v7x TensorCores to get a stream).
            target_steps = 8 if small_vmem else 4
            tb = min(tb, max(8, -(-B // target_steps)))
        tb = max(8, (tb // 8) * 8)                   # sublane-dense output tile
    else:
        # Large bags: fix TB=8 and tile the instance axis instead (bounded VMEM).
        tb = 8
        tn = max(8, ((max_rows // 8) // 8) * 8)
    return tb, tn


def _vmem_limit_bytes(TB, TN, D, H_pad, C_pad, in_itemsize,
                      single_buffer_consts, vmem_cap):
    nbuf = 1 if single_buffer_consts else 2
    need = (2 * TB * TN * D * in_itemsize                     # input, dbl-buffered
            + nbuf * (D * H_pad * 2 + H_pad * 4
                      + H_pad * C_pad * 4 + C_pad * 4)        # weights / biases
            + 2 * TB * C_pad * 4                              # output, dbl-buffered
            + TB * H_pad * 4                                  # pooled scratch
            + 2 * TB * TN * H_pad * 4)                        # f32 activation + temps
    limit = int(need) + 4 * (1 << 20)                         # compiler headroom
    return int(min(max(limit, 16 * (1 << 20)), int(vmem_cap * 0.9)))


# --------------------------------------------------------------------------- #
# Wrapper
# --------------------------------------------------------------------------- #
def mil_forward(bags, w1, b1, w2, b2):
    """bags: (B, N, D) -> logits (B, C) float32."""
    B, N, D = bags.shape
    H = w1.shape[1]
    C = w2.shape[1]
    in_itemsize = jnp.dtype(bags.dtype).itemsize

    # Lane-dense hidden / class dims (exact: zero cols/rows contribute nothing).
    H_pad = max(128, -(-H // 128) * 128)
    C_pad = max(128, -(-C // 128) * 128)

    vmem_cap = _vmem_capacity_bytes()
    TB, TN = _choose_blocks(B, N, D, H_pad, in_itemsize, vmem_cap)
    B_pad = -(-B // TB) * TB
    N_pad = -(-N // TN) * TN

    # Small (weight-sized) prep work done once in the wrapper.
    w1p = jnp.zeros((D, H_pad), jnp.float32).at[:, :H].set(w1).astype(jnp.bfloat16)
    b1p = jnp.zeros((1, H_pad), jnp.float32).at[:, :H].set(b1.reshape(1, H))
    # Fold the 1/N mean divisor into the classifier weight.
    w2p = jnp.zeros((H_pad, C_pad), jnp.float32).at[:H, :C].set(w2 * (1.0 / N))
    # Zero-padded instances contribute exactly ReLU(b1) each to the pooled sum;
    # fold the exact correction into the classifier bias.
    n_pad_inst = N_pad - N
    corr = n_pad_inst * (jnp.maximum(b1p, 0.0) @ w2p)          # (1, C_pad)
    b2p = jnp.zeros((1, C_pad), jnp.float32).at[:, :C].set(b2.reshape(1, C)) - corr

    # Pad bags only when the tiling actually requires it (no bf16 wrapper cast:
    # the kernel casts each tile to bf16 right before the MXU dot).
    bags_p = bags
    if B_pad != B or N_pad != N:
        bags_p = jnp.pad(bags, ((0, B_pad - B), (0, N_pad - N), (0, 0)))

    grid = (B_pad // TB, N_pad // TN)
    flops = 2 * B_pad * N_pad * D * H_pad + 2 * B_pad * H_pad * C_pad
    bytes_accessed = (bags_p.size * in_itemsize + w1p.size * 2
                      + (b1p.size + w2p.size + b2p.size) * 4
                      + B_pad * C_pad * 4)

    def _build_and_run(single_buffer_consts):
        def const_spec(shape):
            idx = lambda b, n: (0,) * len(shape)
            if single_buffer_consts:
                # Constant index_map -> single buffer saves VMEM.
                return pl.BlockSpec(shape, idx, pipeline_mode=pl.Buffered(1))
            return pl.BlockSpec(shape, idx)

        vmem_limit = _vmem_limit_bytes(TB, TN, D, H_pad, C_pad, in_itemsize,
                                       single_buffer_consts, vmem_cap)
        out_p = pl.pallas_call(
            _mil_kernel,
            out_shape=jax.ShapeDtypeStruct((B_pad, C_pad), jnp.float32),
            grid=grid,
            in_specs=[
                pl.BlockSpec((TB, TN, D), lambda b, n: (b, n, 0)),  # bag block
                const_spec((D, H_pad)),                             # encoder W (bf16)
                const_spec((1, H_pad)),                             # encoder bias
                const_spec((H_pad, C_pad)),                         # classifier W (/N)
                const_spec((1, C_pad)),                             # classifier bias
            ],
            out_specs=pl.BlockSpec((TB, C_pad), lambda b, n: (b, 0)),
            scratch_shapes=[pltpu.VMEM((TB, H_pad), jnp.float32)],
            compiler_params=pltpu.CompilerParams(
                dimension_semantics=("parallel", "arbitrary"),
                vmem_limit_bytes=vmem_limit),
            cost_estimate=pl.CostEstimate(
                flops=flops, transcendentals=0, bytes_accessed=bytes_accessed),
        )(bags_p, w1p, b1p, w2p, b2p)
        return jax.block_until_ready(out_p)

    try:
        out = _build_and_run(True)
    except Exception:
        # Fallback if pipeline_mode=pl.Buffered(1) is unavailable on this jax.
        out = _build_and_run(False)

    return out[:B, :C]


# --------------------------------------------------------------------------- #
# Module port
# --------------------------------------------------------------------------- #
class MultipleInstanceModel:
    """JAX/Pallas port of the (concretized) bonfire MultipleInstanceModel."""

    name = "MultipleInstanceModel"

    def __init__(self, n_classes, n_expec_dims, d_in, hidden, key):
        self.n_classes = n_classes
        self.n_expec_dims = n_expec_dims
        k1, k2, k3, k4 = jax.random.split(key, 4)
        # Deterministic synthetic init (PyTorch-style uniform fan-in scaling).
        s1 = 1.0 / (d_in ** 0.5)
        s2 = 1.0 / (hidden ** 0.5)
        self.w1 = jax.random.uniform(k1, (d_in, hidden), jnp.float32, -s1, s1)
        self.b1 = jax.random.uniform(k2, (hidden,), jnp.float32, -s1, s1)
        self.w2 = jax.random.uniform(k3, (hidden, n_classes), jnp.float32, -s2, s2)
        self.b2 = jax.random.uniform(k4, (n_classes,), jnp.float32, -s2, s2)

    def forward(self, model_input):
        return self._internal_forward(model_input)

    def forward_verbose(self, model_input):
        logits = self._internal_forward(model_input)
        return logits, {"bag_logits": logits}

    def _internal_forward(self, bags):
        return mil_forward(bags, self.w1, self.b1, self.w2, self.b2)

    def suggest_train_params(self):
        return {}


def _reference_forward(bags, w1, b1, w2, b2):
    """Pure-JAX reference with the same numerics as the kernel
    (bf16 matmul inputs, f32 accumulation, 1/N folded into w2)."""
    N = bags.shape[1]
    h = jnp.einsum("bnd,dh->bnh",
                   bags.astype(jnp.bfloat16), w1.astype(jnp.bfloat16),
                   preferred_element_type=jnp.float32)
    h = jnp.maximum(h + b1.astype(jnp.float32), 0.0)
    pooled = jnp.sum(h, axis=1)
    return pooled @ (w2 * (1.0 / N)) + b2


if __name__ == "__main__":
    key = jax.random.PRNGKey(0)
    k_data, k_model, k_data2, k_model2 = jax.random.split(key, 4)

    # Case 1: 16 bags, 32 instances/bag, 32-d features, 32 hidden, 4 classes.
    B, N, D, H, C = 16, 32, 32, 32, 4
    bags = jax.random.normal(k_data, (B, N, D), dtype=jnp.float32)
    model = MultipleInstanceModel(n_classes=C, n_expec_dims=1,
                                  d_in=D, hidden=H, key=k_model)
    out = jax.block_until_ready(model.forward(bags))
    ref = _reference_forward(bags, model.w1, model.b1, model.w2, model.b2)
    assert out.shape == (B, C)
    assert jnp.allclose(out, ref, atol=2e-2, rtol=2e-2), "case 1 mismatch"

    # Case 2: ragged bag count (exercises bag padding) + non-128 hidden/classes.
    B2, N2, D2, H2, C2 = 12, 16, 64, 48, 3
    bags2 = jax.random.normal(k_data2, (B2, N2, D2), dtype=jnp.float32)
    model2 = MultipleInstanceModel(n_classes=C2, n_expec_dims=1,
                                   d_in=D2, hidden=H2, key=k_model2)
    out2 = jax.block_until_ready(model2.forward(bags2))
    ref2 = _reference_forward(bags2, model2.w1, model2.b1, model2.w2, model2.b2)
    assert out2.shape == (B2, C2)
    assert jnp.allclose(out2, ref2, atol=2e-2, rtol=2e-2), "case 2 mismatch"

    print("KERNEL_OK")
</pallas_src>

<mosaic_0001>
module attributes {stable_mosaic.version = 11 : i64} {
  func.func @_mil_kernel(%arg0: i32, %arg1: i32, %arg2: memref<8x32x32xf32, #tpu.memory_space<vmem>>, %arg3: memref<32x128xbf16, #tpu.memory_space<vmem>>, %arg4: memref<1x128xf32, #tpu.memory_space<vmem>>, %arg5: memref<128x128xf32, #tpu.memory_space<vmem>>, %arg6: memref<1x128xf32, #tpu.memory_space<vmem>>, %arg7: memref<8x128xf32, #tpu.memory_space<vmem>>, %arg8: memref<8x128xf32, #tpu.memory_space<vmem>>) attributes {dimension_semantics = [#tpu.dimension_semantics<parallel>, #tpu.dimension_semantics<arbitrary>], iteration_bounds = array<i64: 2, 1>, scalar_prefetch = 0 : i64, scratch_operands = 1 : i64, tpu.core_type = #tpu.core_type<tc>, window_params = [{transform_indices = @transform_0, window_bounds = array<i64: 8, 32, 32>}, {pipeline_mode = #tpu.pipeline_mode<synchronous>, transform_indices = @transform_1, window_bounds = array<i64: 32, 128>}, {pipeline_mode = #tpu.pipeline_mode<synchronous>, transform_indices = @transform_2, window_bounds = array<i64: 1, 128>}, {pipeline_mode = #tpu.pipeline_mode<synchronous>, transform_indices = @transform_3, window_bounds = array<i64: 128, 128>}, {pipeline_mode = #tpu.pipeline_mode<synchronous>, transform_indices = @transform_4, window_bounds = array<i64: 1, 128>}, {transform_indices = @transform_5, window_bounds = array<i64: 8, 128>}]} {
    %c0_i32 = arith.constant 0 : i32
    %0 = arith.cmpi eq, %arg1, %c0_i32 : i32
    %1 = arith.extui %0 : i1 to i32
    %c0_i32_0 = arith.constant 0 : i32
    %2 = arith.cmpi ne, %1, %c0_i32_0 : i32
    scf.if %2 {
      %cst_15 = arith.constant 0.000000e+00 : f32
      %21 = vector.broadcast %cst_15 : f32 to vector<8x128xf32>
      %c0_16 = arith.constant 0 : index
      %c0_17 = arith.constant 0 : index
      %22 = vector.load %arg8[%c0_16, %c0_17] : memref<8x128xf32, #tpu.memory_space<vmem>>, vector<8x128xf32>
      tpu.vector_store %arg8[%c0_16, %c0_17], %21 {strides = array<i32>} : memref<8x128xf32, #tpu.memory_space<vmem>>, vector<8x128xf32>,
    } else {
    }
    %c0 = arith.constant 0 : index
    %c0_1 = arith.constant 0 : index
    %c0_2 = arith.constant 0 : index
    %3 = vector.load %arg2[%c0, %c0_1, %c0_2] : memref<8x32x32xf32, #tpu.memory_space<vmem>>, vector<8x32x32xf32>
    %4 = vector.shape_cast %3 : vector<8x32x32xf32> to vector<256x32xf32>
    %5 = arith.truncf %4 : vector<256x32xf32> to vector<256x32xbf16>
    %c0_3 = arith.constant 0 : index
    %c0_4 = arith.constant 0 : index
    %6 = vector.load %arg3[%c0_3, %c0_4] : memref<32x128xbf16, #tpu.memory_space<vmem>>, vector<32x128xbf16>
    %cst = arith.constant dense<0.000000e+00> : vector<256x128xf32>
    %7 = tpu.matmul %5, %6, %cst {dimension_numbers = #tpu.dot_dimension_numbers<[1], [0], [0], [1], [0, 0, 1, 1], [], []>} : vector<256x32xbf16>, vector<32x128xbf16>, vector<256x128xf32> -> vector<256x128xf32>
    %c0_5 = arith.constant 0 : index
    %c0_6 = arith.constant 0 : index
    %8 = vector.load %arg4[%c0_5, %c0_6] : memref<1x128xf32, #tpu.memory_space<vmem>>, vector<1x128xf32>
    %9 = vector.broadcast %8 : vector<1x128xf32> to vector<256x128xf32>
    %10 = arith.addf %7, %9 : vector<256x128xf32>
    %cst_7 = arith.constant 0.000000e+00 : f32
    %11 = vector.broadcast %cst_7 : f32 to vector<256x128xf32>
    %12 = arith.maximumf %10, %11 : vector<256x128xf32>
    %c0_8 = arith.constant 0 : index
    %c0_9 = arith.constant 0 : index
    %13 = vector.load %arg8[%c0_8, %c0_9] : memref<8x128xf32, #tpu.memory_space<vmem>>, vector<8x128xf32>
    %14 = vector.shape_cast %12 : vector<256x128xf32> to vector<8x32x128xf32>
    %cst_10 = arith.constant dense<0.000000e+00> : vector<8x128xf32>
    %15 = vector.multi_reduction <add>, %14, %cst_10 [1] : vector<8x32x128xf32> to vector<8x128xf32>
    %16 = arith.addf %13, %15 : vector<8x128xf32>
    %c0_11 = arith.constant 0 : index
    %c0_12 = arith.constant 0 : index
    %17 = vector.load %arg8[%c0_11, %c0_12] : memref<8x128xf32, #tpu.memory_space<vmem>>, vector<8x128xf32>
    tpu.vector_store %arg8[%c0_11, %c0_12], %16 {strides = array<i32>} : memref<8x128xf32, #tpu.memory_space<vmem>>, vector<8x128xf32>,
    %c0_i32_13 = arith.constant 0 : i32
    %18 = arith.cmpi eq, %arg1, %c0_i32_13 : i32
    %19 = arith.extui %18 : i1 to i32
    %c0_i32_14 = arith.constant 0 : i32
    %20 = arith.cmpi ne, %19, %c0_i32_14 : i32
    scf.if %20 {
      %c0_15 = arith.constant 0 : index
      %c0_16 = arith.constant 0 : index
      %21 = vector.load %arg8[%c0_15, %c0_16] : memref<8x128xf32, #tpu.memory_space<vmem>>, vector<8x128xf32>
      %c0_17 = arith.constant 0 : index
      %c0_18 = arith.constant 0 : index
      %22 = vector.load %arg5[%c0_17, %c0_18] : memref<128x128xf32, #tpu.memory_space<vmem>>, vector<128x128xf32>
      %cst_19 = arith.constant dense<0.000000e+00> : vector<8x128xf32>
      %23 = tpu.matmul %21, %22, %cst_19 {dimension_numbers = #tpu.dot_dimension_numbers<[1], [0], [0], [1], [0, 0, 1, 1], [], []>} : vector<8x128xf32>, vector<128x128xf32>, vector<8x128xf32> -> vector<8x128xf32>
      %c0_20 = arith.constant 0 : index
      %c0_21 = arith.constant 0 : index
      %24 = vector.load %arg6[%c0_20, %c0_21] : memref<1x128xf32, #tpu.memory_space<vmem>>, vector<1x128xf32>
      %25 = vector.broadcast %24 : vector<1x128xf32> to vector<8x128xf32>
      %26 = arith.addf %23, %25 : vector<8x128xf32>
      %c0_22 = arith.constant 0 : index
      %c0_23 = arith.constant 0 : index
      %27 = vector.load %arg7[%c0_22, %c0_23] : memref<8x128xf32, #tpu.memory_space<vmem>>, vector<8x128xf32>
      tpu.vector_store %arg7[%c0_22, %c0_23], %26 {strides = array<i32>} : memref<8x128xf32, #tpu.memory_space<vmem>>, vector<8x128xf32>,
    } else {
    }
    return
  }
  func.func @transform_0(%arg0: i32, %arg1: i32) -> (i32, i32, i32) {
    %c0_i32 = arith.constant 0 : i32
    %c0_i32_0 = arith.constant 0 : i32
    return %arg0, %arg1, %c0_i32 : i32, i32, i32
  }
  func.func @transform_1(%arg0: i32, %arg1: i32) -> (i32, i32) {
    %c0_i32 = arith.constant 0 : i32
    %c0_i32_0 = arith.constant 0 : i32
    %c0_i32_1 = arith.constant 0 : i32
    return %c0_i32, %c0_i32_0 : i32, i32
  }
  func.func @transform_2(%arg0: i32, %arg1: i32) -> (i32, i32) {
    %c0_i32 = arith.constant 0 : i32
    %c0_i32_0 = arith.constant 0 : i32
    %c0_i32_1 = arith.constant 0 : i32
    return %c0_i32, %c0_i32_0 : i32, i32
  }
  func.func @transform_3(%arg0: i32, %arg1: i32) -> (i32, i32) {
    %c0_i32 = arith.constant 0 : i32
    %c0_i32_0 = arith.constant 0 : i32
    %c0_i32_1 = arith.constant 0 : i32
    return %c0_i32, %c0_i32_0 : i32, i32
  }
  func.func @transform_4(%arg0: i32, %arg1: i32) -> (i32, i32) {
    %c0_i32 = arith.constant 0 : i32
    %c0_i32_0 = arith.constant 0 : i32
    %c0_i32_1 = arith.constant 0 : i32
    return %c0_i32, %c0_i32_0 : i32, i32
  }
  func.func @transform_5(%arg0: i32, %arg1: i32) -> (i32, i32) {
    %c0_i32 = arith.constant 0 : i32
    %c0_i32_0 = arith.constant 0 : i32
    return %arg0, %c0_i32 : i32, i32
  }
}

module attributes {stable_mosaic.version = 11 : i64} {
  func.func @_mil_kernel(%arg0: i32, %arg1: i32, %arg2: memref<8x32x32xf32, #tpu.memory_space<vmem>>, %arg3: memref<32x128xbf16, #tpu.memory_space<vmem>>, %arg4: memref<1x128xf32, #tpu.memory_space<vmem>>, %arg5: memref<128x128xf32, #tpu.memory_space<vmem>>, %arg6: memref<1x128xf32, #tpu.memory_space<vmem>>, %arg7: memref<8x128xf32, #tpu.memory_space<vmem>>, %arg8: memref<8x128xf32, #tpu.memory_space<vmem>>) attributes {dimension_semantics = [#tpu.dimension_semantics<parallel>, #tpu.dimension_semantics<arbitrary>], iteration_bounds = array<i64: 2, 1>, scalar_prefetch = 0 : i64, scratch_operands = 1 : i64, tpu.core_type = #tpu.core_type<tc>, window_params = [{transform_indices = @transform_0, window_bounds = array<i64: 8, 32, 32>}, {pipeline_mode = #tpu.pipeline_mode<synchronous>, transform_indices = @transform_1, window_bounds = array<i64: 32, 128>}, {pipeline_mode = #tpu.pipeline_mode<synchronous>, transform_indices = @transform_2, window_bounds = array<i64: 1, 128>}, {pipeline_mode = #tpu.pipeline_mode<synchronous>, transform_indices = @transform_3, window_bounds = array<i64: 128, 128>}, {pipeline_mode = #tpu.pipeline_mode<synchronous>, transform_indices = @transform_4, window_bounds = array<i64: 1, 128>}, {transform_indices = @transform_5, window_bounds = array<i64: 8, 128>}]} {
    %c0_i32 = arith.constant 0 : i32
    %0 = arith.cmpi eq, %arg1, %c0_i32 : i32
    %1 = arith.extui %0 : i1 to i32
    %c0_i32_0 = arith.constant 0 : i32
    %2 = arith.cmpi ne, %1, %c0_i32_0 : i32
    scf.if %2 {
      %cst_15 = arith.constant 0.000000e+00 : f32
      %21 = vector.broadcast %cst_15 : f32 to vector<8x128xf32>
      %c0_16 = arith.constant 0 : index
      %c0_17 = arith.constant 0 : index
      %22 = vector.load %arg8[%c0_16, %c0_17] : memref<8x128xf32, #tpu.memory_space<vmem>>, vector<8x128xf32>
      tpu.vector_store %arg8[%c0_16, %c0_17], %21 {strides = array<i32>} : memref<8x128xf32, #tpu.memory_space<vmem>>, vector<8x128xf32>,
    } else {
    }
    %c0 = arith.constant 0 : index
    %c0_1 = arith.constant 0 : index
    %c0_2 = arith.constant 0 : index
    %3 = vector.load %arg2[%c0, %c0_1, %c0_2] : memref<8x32x32xf32, #tpu.memory_space<vmem>>, vector<8x32x32xf32>
    %4 = vector.shape_cast %3 : vector<8x32x32xf32> to vector<256x32xf32>
    %5 = arith.truncf %4 : vector<256x32xf32> to vector<256x32xbf16>
    %c0_3 = arith.constant 0 : index
    %c0_4 = arith.constant 0 : index
    %6 = vector.load %arg3[%c0_3, %c0_4] : memref<32x128xbf16, #tpu.memory_space<vmem>>, vector<32x128xbf16>
    %cst = arith.constant dense<0.000000e+00> : vector<256x128xf32>
    %7 = tpu.matmul %5, %6, %cst {dimension_numbers = #tpu.dot_dimension_numbers<[1], [0], [0], [1], [0, 0, 1, 1], [], []>} : vector<256x32xbf16>, vector<32x128xbf16>, vector<256x128xf32> -> vector<256x128xf32>
    %c0_5 = arith.constant 0 : index
    %c0_6 = arith.constant 0 : index
    %8 = vector.load %arg4[%c0_5, %c0_6] : memref<1x128xf32, #tpu.memory_space<vmem>>, vector<1x128xf32>
    %9 = vector.broadcast %8 : vector<1x128xf32> to vector<256x128xf32>
    %10 = arith.addf %7, %9 : vector<256x128xf32>
    %cst_7 = arith.constant 0.000000e+00 : f32
    %11 = vector.broadcast %cst_7 : f32 to vector<256x128xf32>
    %12 = arith.maximumf %10, %11 : vector<256x128xf32>
    %c0_8 = arith.constant 0 : index
    %c0_9 = arith.constant 0 : index
    %13 = vector.load %arg8[%c0_8, %c0_9] : memref<8x128xf32, #tpu.memory_space<vmem>>, vector<8x128xf32>
    %14 = vector.shape_cast %12 : vector<256x128xf32> to vector<8x32x128xf32>
    %cst_10 = arith.constant dense<0.000000e+00> : vector<8x128xf32>
    %15 = vector.multi_reduction <add>, %14, %cst_10 [1] : vector<8x32x128xf32> to vector<8x128xf32>
    %16 = arith.addf %13, %15 : vector<8x128xf32>
    %c0_11 = arith.constant 0 : index
    %c0_12 = arith.constant 0 : index
    %17 = vector.load %arg8[%c0_11, %c0_12] : memref<8x128xf32, #tpu.memory_space<vmem>>, vector<8x128xf32>
    tpu.vector_store %arg8[%c0_11, %c0_12], %16 {strides = array<i32>} : memref<8x128xf32, #tpu.memory_space<vmem>>, vector<8x128xf32>,
    %c0_i32_13 = arith.constant 0 : i32
    %18 = arith.cmpi eq, %arg1, %c0_i32_13 : i32
    %19 = arith.extui %18 : i1 to i32
    %c0_i32_14 = arith.constant 0 : i32
    %20 = arith.cmpi ne, %19, %c0_i32_14 : i32
    scf.if %20 {
      %c0_15 = arith.constant 0 : index
      %c0_16 = arith.constant 0 : index
      %21 = vector.load %arg8[%c0_15, %c0_16] : memref<8x128xf32, #tpu.memory_space<vmem>>, vector<8x128xf32>
      %c0_17 = arith.constant 0 : index
      %c0_18 = arith.constant 0 : index
      %22 = vector.load %arg5[%c0_17, %c0_18] : memref<128x128xf32, #tpu.memory_space<vmem>>, vector<128x128xf32>
      %cst_19 = arith.constant dense<0.000000e+00> : vector<8x128xf32>
      %23 = tpu.matmul %21, %22, %cst_19 {dimension_numbers = #tpu.dot_dimension_numbers<[1], [0], [0], [1], [0, 0, 1, 1], [], []>} : vector<8x128xf32>, vector<128x128xf32>, vector<8x128xf32> -> vector<8x128xf32>
      %c0_20 = arith.constant 0 : index
      %c0_21 = arith.constant 0 : index
      %24 = vector.load %arg6[%c0_20, %c0_21] : memref<1x128xf32, #tpu.memory_space<vmem>>, vector<1x128xf32>
      %25 = vector.broadcast %24 : vector<1x128xf32> to vector<8x128xf32>
      %26 = arith.addf %23, %25 : vector<8x128xf32>
      %c0_22 = arith.constant 0 : index
      %c0_23 = arith.constant 0 : index
      %27 = vector.load %arg7[%c0_22, %c0_23] : memref<8x128xf32, #tpu.memory_space<vmem>>, vector<8x128xf32>
      tpu.vector_store %arg7[%c0_22, %c0_23], %26 {strides = array<i32>} : memref<8x128xf32, #tpu.memory_space<vmem>>, vector<8x128xf32>,
    } else {
    }
    return
  }
  func.func @transform_0(%arg0: i32, %arg1: i32) -> (i32, i32, i32) {
    %c0_i32 = arith.constant 0 : i32
    %c0_i32_0 = arith.constant 0 : i32
    return %arg0, %arg1, %c0_i32 : i32, i32, i32
  }
  func.func @transform_1(%arg0: i32, %arg1: i32) -> (i32, i32) {
    %c0_i32 = arith.constant 0 : i32
    %c0_i32_0 = arith.constant 0 : i32
    %c0_i32_1 = arith.constant 0 : i32
    return %c0_i32, %c0_i32_0 : i32, i32
  }
  func.func @transform_2(%arg0: i32, %arg1: i32) -> (i32, i32) {
    %c0_i32 = arith.constant 0 : i32
    %c0_i32_0 = arith.constant 0 : i32
    %c0_i32_1 = arith.constant 0 : i32
    return %c0_i32, %c0_i32_0 : i32, i32
  }
  func.func @transform_3(%arg0: i32, %arg1: i32) -> (i32, i32) {
    %c0_i32 = arith.constant 0 : i32
    %c0_i32_0 = arith.constant 0 : i32
    %c0_i32_1 = arith.constant 0 : i32
    return %c0_i32, %c0_i32_0 : i32, i32
  }
  func.func @transform_4(%arg0: i32, %arg1: i32) -> (i32, i32) {
    %c0_i32 = arith.constant 0 : i32
    %c0_i32_0 = arith.constant 0 : i32
    %c0_i32_1 = arith.constant 0 : i32
    return %c0_i32, %c0_i32_0 : i32, i32
  }
  func.func @transform_5(%arg0: i32, %arg1: i32) -> (i32, i32) {
    %c0_i32 = arith.constant 0 : i32
    %c0_i32_0 = arith.constant 0 : i32
    return %arg0, %c0_i32 : i32, i32
  }
}

</mosaic_0001>

<bundles_post_ra>
// kernel: tpu_custom_call.1
= control target key start
LH: loop header
LB: loop body
LE: loop exit
PB: predicated region body
PF: predicated region fallthrough
CT: control target
= control target key end

     0   :  { %10 = vsyncpa [#allocation4], 0  ;;  %s1757_s0 = inlined_call_operand.hbm [shape: f32[16,32,32], index: 0, kind: input, shape index: {}]   ;;  %s1758_s1 = inlined_call_operand.hbm [shape: bf16[32,128], index: 1, kind: input, shape index: {}]   ;;  %s1759_s2 = inlined_call_operand.vmem [shape: f32[1,128], index: 2, kind: input, shape index: {}]   ;;  %s1760_s3 = inlined_call_operand.hbm [shape: f32[128,128], index: 3, kind: input, shape index: {}]   ;;  %s1761_s4 = inlined_call_operand.vmem [shape: f32[1,128], index: 4, kind: input, shape index: {}]   ;;  %s1762_s5 = inlined_call_operand.hbm [shape: f32[16,128], index: 5, kind: output, shape index: {}]  }
   0x1   :  { %12 = vsyncpa [#allocation4 + $0x1], 0 }
   0x2   :  { %13 = vsyncpa [#allocation7], 0 }
   0x3   :  { %14 = vsyncpa [#allocation5], 0 }
   0x4   :  { %16 = vsyncpa [#allocation5 + $0x1], 0  ;;  %s1402_s18 = smov 0   ;;  %s1404_s19 = smov 0  }
   0x5   :  { %s1406_s20 = smov 0   ;;  %s1408_s21 = smov 0  }
   0x6   :  { %s1410_s22 = smov 0   ;;  %s1412_s23 = smov 0  }
   0x7 LB: > { %s920_s24 = sadd.s32 4294967295, %s1359_s23   ;;  %s921_s25 = sadd.s32 4294967294, %s1359_s23   ;;  %s1359_s23 = sphi %s1412_s23, %s22_s23   ;;  %s1355_s22 = sphi %s1410_s22, %s1786_s22   ;;  %s1351_s21 = sphi %s1408_s21, %s1785_s21   ;;  %s1347_s20 = sphi %s1406_s20, %s1784_s20   ;;  %s1343_s19 = sphi %s1404_s19, %s1783_s19   ;;  %s1339_s18 = sphi %s1402_s18, %s1782_s18  }
   0x8   : > { %p56_p0 = scmp.ne.s32.totalorder %s1343_s19, %s1339_s18  ;;  %p1436_p1 = scmp.eq.s32.totalorder %s920_s24, 0 }
   0x9   : > { %p1440_p2 = scmp.eq.s32.totalorder %s920_s24, 1  ;;  %p170_p3 = scmp.eq.s32.totalorder %s921_s25, 1 }
   0xa   : > { %s1768_s26 = scalar_select %p1436_p1, 1, 0 }
   0xb   : > { %p1446_p4 = por %p1436_p1, %p56_p0  ;;  %p922_p5 = scmp.ge.s32.totalorder %s1359_s23, 1 }
   0xc   : > { %p1451_p6 = por %p170_p3, %p56_p0  ;;  %p177_p7 = scmp.lt.s32.totalorder %s1359_s23, 3 }
   0xd   : > { %s1770_s28 = scalar_select %p1446_p4, 1, 0 }
   0xe   : > { %s1771_s29 = scalar_select %p1451_p6, 1, 0 }
   0xf   : > { %p1456_p8 = pnand %p922_p5, %p177_p7  ;;  %s1361_s6 = smov [#allocation6]  }
  0x10   : > { %s189_s7 = sshll.u32 %s1361_s6, 4  ;;  %s1362_s9 = smov [#allocation8]   ;;  %s1460_s7 = int_to_ptr.vmem [resolvable:$true] %s189_s7 }
  0x11   : > { %p1107_p9 = pneg %p1456_p8  ;;  %s205_s10 = sshll.u32 %s1362_s9, 4  ;;  %s1471_s10 = int_to_ptr.vmem [resolvable:$true] %s205_s10 }
  0x12   : > { %s1187_s13 = scalar_lea.hbm %s1758_s1, 256 }
  0x13   : > { %p1467_p11 = pnand %p1107_p9, %p1436_p1  ;;  %p1188_p12 = scmp.ne.s32.totalorder %s1758_s1, %s1187_s13 }
  0x14   : > { %p1194_p5 = scmp.lt.u32.totalorder %s1187_s13, %s1758_s1 }
  0x15   : > { %p1189_p13 = pneg %p1467_p11 }
  0x17   : > { %p1190_p0 = pnand %p1189_p13, %p1188_p12 }
  0x19   : > { %p1191_p3 = pneg %p1190_p0 }
  0x1b   : > { %p1196_p7 = pnand %p1194_p5, %p1191_p3 }
  0x1d   : > { %1199 = shalt.err (!%p1196_p7)
}
  0x1e   : > { %s1200_s24 = scalar_lea.vmem %s1460_s7, 256  ;;  %p1208_p1 = scmp.lt.s32.totalorder %s1460_s7, %s1460_s7 }
  0x1f   : > { %p1201_p9 = scmp.ne.s32.totalorder %s1460_s7, %s1200_s24  ;;  %p1209_p12 = scmp.lt.s32.totalorder %s1200_s24, %s1200_s24 }
  0x21   : > { %p1203_p10 = pnand %p1201_p9, %p1189_p13  ;;  %p1210_p0 = por %p1209_p12, %p1208_p1 }
  0x23   : > { %p1204_p6 = pneg %p1203_p10 }
  0x25   : > { %p1211_p4 = pnand %p1210_p0, %p1204_p6 }
  0x27   : > { %1214 = shalt.err (!%p1211_p4)
}
  0x28   : > { %s1363_s25 = smov 64   ;;  %s1364_s6 = smov 4  }
  0x29   : > { %1110 = dma.hbm_to_vmem [thread:$0]  (!%p1467_p11), %s1758_s1, 256, %s1460_s7, [#allocation7], %s1363_s25, %s1363_s25, %s1364_s6  }
  0x2a   : > { %s1215_s14 = scalar_lea.hbm %s1760_s3, 2048 }
  0x2b   : > { %p1216_p1 = scmp.ne.s32.totalorder %s1760_s3, %s1215_s14  ;;  %p1222_p10 = scmp.lt.u32.totalorder %s1215_s14, %s1760_s3 }
  0x2d   : > { %p1218_p4 = pnand %p1216_p1, %p1189_p13 }
  0x2f   : > { %p1219_p6 = pneg %p1218_p4 }
  0x31   : > { %p1224_p3 = pnand %p1222_p10, %p1219_p6 }
  0x33   : > { %1227 = shalt.err (!%p1224_p3)
}
  0x34   : > { %s1228_s7 = scalar_lea.vmem %s1471_s10, 2048  ;;  %p1236_p12 = scmp.lt.s32.totalorder %s1471_s10, %s1471_s10 }
  0x35   : > { %p1229_p5 = scmp.ne.s32.totalorder %s1471_s10, %s1228_s7  ;;  %p1237_p0 = scmp.lt.s32.totalorder %s1228_s7, %s1228_s7 }
  0x37   : > { %p1231_p7 = pnand %p1229_p5, %p1189_p13  ;;  %p1238_p1 = por %p1237_p0, %p1236_p12 }
  0x39   : > { %p1232_p9 = pneg %p1231_p7 }
  0x3b   : > { %p1239_p4 = pnand %p1238_p1, %p1232_p9 }
  0x3d   : > { %1242 = shalt.err (!%p1239_p4)
}
  0x3e   : > { %s1766_s25 = smov 128   ;;  %s1366_s6 = smov 8  }
  0x3f   : > { %1113 = dma.hbm_to_vmem [thread:$0]  (!%p1467_p11), %s1760_s3, 2048, %s1471_s10, [#allocation7], %s1766_s25, %s1766_s25, %s1366_s6  }
  0x40   : > { %s34_s12 = sadd.s32 1, %s1355_s22  ;;  %s43_s13 = sadd.s32 1, %s1347_s20 }
  0x41   : > { %p36_p13 = scmp.ge.s32.totalorder %s34_s12, 2  ;;  %p50_p6 = scmp.ne.s32.totalorder %s1347_s20, %s1343_s19 }
  0x42   : > { %p51_p10 = scmp.eq.s32.totalorder %s1359_s23, 0  ;;  %p1124_p3 = scmp.lt.s32.totalorder %s1359_s23, 2 }
  0x43   : > { %s1788_s12 = smov (%p36_p13, %s34_s12), 0  ;;  %p1538_p7 = por %p1440_p2, %p50_p6 }
  0x44   : > { %p52_p5 = por %p51_p10, %p50_p6  ;;  %s38_s14 = ssub.s32 %s1355_s22, %s1788_s12 }
  0x45   : > { %s1774_s8 = scalar_select %p1538_p7, 1, 0 }
  0x46   : > { %s222_s15 = sand.u32 1, %s1347_s20   ;;  %p41_p9 = scmp.eq.s32.totalorder %s38_s14, 0 }
  0x47   : > { %s926_s10 = sshll.u32 %s222_s15, 8  ;;  %s960_s16 = sshll.u32 %s1355_s22, 12 }
  0x48   : > { %s1547_s17 = scalar_select %p41_p9, %s1347_s20, %s43_s13  }
  0x49   : > { %s1552_s9 = scalar_lea.hbm %s1757_s0, %s960_s16  ;;  %s226_s27 = scalar_lea.vmem [#allocation3], %s926_s10 }
  0x4a   : > { %s236_s11 = sshll.u32 %s226_s27, 4  ;;  %p1556_p2 = pnand %p1124_p3, %p52_p5  ;;  %s1560_s11 = int_to_ptr.vmem [resolvable:$true] %s236_s11 }
  0x4b   : > { %s1562_s13 = scalar_lea.sflag [#allocation4], %s222_s15  ;;  %s1243_s14 = scalar_lea.hbm %s1552_s9, 4096 }
  0x4c   : > { %p1244_p11 = scmp.ne.s32.totalorder %s1552_s9, %s1243_s14  ;;  %p1245_p12 = pneg %p1556_p2 }
  0x4d   : > { %s1248_s24 = scalar_lea.hbm %s1757_s0, 8192  ;;  %p1249_p4 = scmp.lt.u32.totalorder %s1552_s9, %s1757_s0 }
  0x4e   : > { %p1246_p0 = pnand %p1245_p12, %p1244_p11  ;;  %p1250_p13 = scmp.lt.u32.totalorder %s1248_s24, %s1243_s14 }
  0x4f   : > { %p1252_p10 = scmp.lt.u32.totalorder %s1243_s14, %s1552_s9 }
  0x50   : > { %p1247_p1 = pneg %p1246_p0  ;;  %p1251_p6 = por %p1250_p13, %p1249_p4 }
  0x52   : > { %p1253_p3 = por %p1252_p10, %p1251_p6 }
  0x54   : > { %p1254_p5 = pnand %p1253_p3, %p1247_p1 }
  0x56   : > { %1257 = shalt.err (!%p1254_p5)
}
  0x57   : > { %s1258_s15 = scalar_lea.vmem %s1560_s11, 4096  ;;  %s1367_s10 = smov [#allocation3]  }
  0x58   : > { %p1259_p9 = scmp.ne.s32.totalorder %s1560_s11, %s1258_s15  ;;  %s1263_s16 = sshll.u32 %s1367_s10, 4  ;;  %s1264_s16 = int_to_ptr.vmem [resolvable:$false] %s1263_s16 }
  0x59   : > { %s1265_s7 = scalar_lea.vmem %s1264_s16, 8192  ;;  %p1266_p7 = scmp.lt.s32.totalorder %s1560_s11, %s1264_s16 }
  0x5a   : > { %p1261_p11 = pnand %p1259_p9, %p1245_p12  ;;  %p1267_p4 = scmp.lt.s32.totalorder %s1265_s7, %s1258_s15 }
  0x5c   : > { %p1262_p0 = pneg %p1261_p11  ;;  %p1268_p13 = por %p1267_p4, %p1266_p7 }
  0x5e   : > { %p1269_p6 = pnand %p1268_p13, %p1262_p0 }
  0x60   : > { %1272 = shalt.err (!%p1269_p6)
}
  0x61   : > { %s1776_s14 = smov 128   ;;  %248 = sbr.rel (%p1456_p8) target bundleno = 611 (0x263), region = 40 }
  0x62   : > { %1117 = dma.hbm_to_vmem [thread:$0]  (!%p1556_p2), %s1552_s9, 4096, %s1560_s11, %s1562_s13, %s1776_s14, %s1776_s14, %s1366_s6  }
  0x63   : > { %s1596_s24 = sand.u32 (!%p1456_p8), 1, %s1343_s19   ;;  %p1777_p7 = scmp.ne.s32.totalorder (!%p1456_p8), %s1770_s28, 0 }
  0x64   : > { %s931_s27 = sshll.u32 (!%p1456_p8), %s1596_s24, 8  ;;  %s251_s15 = scalar_lea.sflag (!%p1456_p8), [#allocation4], %s1596_s24 }
  0x65   : > { %s1600_s10 = scalar_lea.vmem (!%p1456_p8), [#allocation3], %s931_s27 }
  0x68   : > { %1326 = dma.done.wait (%p1777_p7), %s251_s15, 4096  }
  0x69   : > { %1328 = vsyncadd (%p1777_p7), %s251_s15, 4294963200  ;;  %p1778_p2 = scmp.ne.s32.totalorder %s1768_s26, 0 }
  0x6b   : > { %1330 = dma.done.wait (%p1778_p2), [#allocation7], 2304  }
  0x6c   : > { %1332 = vsyncadd (%p1778_p2), [#allocation7], 4294964992  ;;  %v1185_v0 = vld [vmem:[#allocation6] sm:$0xff]   ;;  %v1186_v1 = vld [vmem:[#allocation6 + $0x8] sm:$0xff]   ;;  %vm368_vm0 = vcmask 261120   ;;  %v1368_v53 = vmov 0.0|0.0  }
  0x6d   : > { %996 = vmatprep.subr.bf16.mxu0 %v1185_v0  ;;  %1091 = vmatprep.subr.bf16.mxu1 %v1185_v0  ;;  %v297_v2 = vld [vmem:[%s1600_s10] sm:$0xff]  ;;  %v298_v3 = vld [vmem:[%s1600_s10 + $0x8] sm:$0xff]  ;;  %v299_v7 = vld [vmem:[%s1600_s10 + $0x10] sm:$0xff]  ;;  %vm1369_vm1 = vmmov 0   ;;  %vm691_vm2 = vcmask 1041409   ;;  %vm693_vm3 = vcmask 1042434  }
  0x6e   : > { %v313_v4 = vld [vmem:[%s1600_s10 + $0x80] sm:$0xff]  ;;  %997 = vmatpush3.bf16.msra.mxu0 %v1185_v0  ;;  %1093 = vmatpush3.bf16.msra.mxu1 %v1185_v0  ;;  %v329_v5 = vpack.c.bf16 %v298_v3, %v297_v2  ;;  %v314_v6 = vld [vmem:[%s1600_s10 + $0x88] sm:$0xff]  ;;  %v300_v8 = vld [vmem:[%s1600_s10 + $0x18] sm:$0xff]  ;;  %vm695_vm4 = vcmask 1043459   ;;  %vm697_vm5 = vcmask 1044484   ;;  %vm699_vm6 = vcmask 1045509  }
  0x6f   : > { %998 = vmatprep.subr.bf16.mxu0 %v1186_v1  ;;  %1092 = vmatprep.subr.bf16.mxu1 %v1186_v1  ;;  %v337_v9 = vpack.c.bf16 %v314_v6, %v313_v4  ;;  %v315_v10 = vld [vmem:[%s1600_s10 + $0x90] sm:$0xff]  ;;  %v316_v11 = vld [vmem:[%s1600_s10 + $0x98] sm:$0xff]  ;;  %v301_v12 = vld [vmem:[%s1600_s10 + $0x20] sm:$0xff]  ;;  %v330_v16 = vpack.c.bf16 %v300_v8, %v299_v7  ;;  %vm701_vm7 = vcmask 1046534   ;;  %vm703_vm8 = vcmask 1047559   ;;  %s934_s30 = sshll.u32 %s1596_s24, 3 }
  0x70   : > { %1000 = vmatprep.mubr.msk.bf16.mxu0 %vm368_vm0, %v329_v5  ;;  %v302_v13 = vld [vmem:[%s1600_s10 + $0x28] sm:$0xff]  ;;  %v317_v14 = vld [vmem:[%s1600_s10 + $0xa0] sm:$0xff]  ;;  %v338_v17 = vpack.c.bf16 %v316_v11, %v315_v10  ;;  %v303_v20 = vld [vmem:[%s1600_s10 + $0x30] sm:$0xff]  ;;  %v1370_v11 = vmov 0.0   ;;  %s956_s9 = sshll.u32 %s1351_s21, 7  ;;  %s288_s11 = scalar_lea.vmem [#allocation9], %s934_s30 }
  0x71   : > { %v318_v15 = vld [vmem:[%s1600_s10 + $0xa8] sm:$0xff]  ;;  %1016 = vmatprep.mubr.msk.bf16.mxu1 %vm368_vm0, %v337_v9  ;;  %v331_v18 = vpack.c.bf16 %v302_v13, %v301_v12  ;;  %v304_v21 = vld [vmem:[%s1600_s10 + $0x38] sm:$0xff]  ;;  %v319_v22 = vld [vmem:[%s1600_s10 + $0xb0] sm:$0xff]  ;;  %s820_s13 = sshll.u32 %s288_s11, 4  ;;  %s1708_s14 = scalar_lea.hbm %s1762_s5, %s956_s9  ;;  %s1710_s13 = int_to_ptr.vmem [resolvable:$true] %s820_s13 }
  0x72   : > { %999 = vmatpush3.bf16.msra.mxu0 %v1186_v1  ;;  %1094 = vmatpush3.bf16.msra.mxu1 %v1186_v1  ;;  %v339_v19 = vpack.c.bf16 %v318_v15, %v317_v14  ;;  %v320_v23 = vld [vmem:[%s1600_s10 + $0xb8] sm:$0xff]  ;;  %v305_v24 = vld [vmem:[%s1600_s10 + $0x40] sm:$0xff]  ;;  %v306_v25 = vld [vmem:[%s1600_s10 + $0x48] sm:$0xff]  ;;  %v332_v28 = vpack.c.bf16 %v304_v21, %v303_v20  ;;  %s807_s27 = scalar_lea.sflag [#allocation5], %s1596_s24  ;;  %s1273_s15 = scalar_lea.vmem %s1710_s13, 128 }
  0x73   : > { %v321_v26 = vld [vmem:[%s1600_s10 + $0xc0] sm:$0xff]  ;;  %v322_v27 = vld [vmem:[%s1600_s10 + $0xc8] sm:$0xff]  ;;  %v340_v29 = vpack.c.bf16 %v320_v23, %v319_v22  ;;  %v333_v30 = vpack.c.bf16 %v306_v25, %v305_v24  ;;  %v307_v32 = vld [vmem:[%s1600_s10 + $0x50] sm:$0xff]  ;;  %1067 = vmatprep.subr.bf16.mxu1 %v1368_v53  ;;  %p1274_p8 = scmp.ne.s32.totalorder %s1710_s13, %s1273_s15  ;;  %p1779_p12 = scmp.ne.s32.totalorder %s1774_s8, 0 }
  0x74   : > { %v341_v31 = vpack.c.bf16 %v322_v27, %v321_v26  ;;  %v308_v33 = vld [vmem:[%s1600_s10 + $0x58] sm:$0xff]  ;;  %v323_v34 = vld [vmem:[%s1600_s10 + $0xd0] sm:$0xff]  ;;  %v309_v36 = vld [vmem:[%s1600_s10 + $0x60] sm:$0xff]  ;;  %s1371_s21 = smov [#allocation9]  }
  0x75   : > { %1001 = vmatmul.mubr.msk.bf16.vlgmr.msra.gmra.mrb[0].mxu0 %vm368_vm0, %v330_v16  ;;  %1017 = vmatmul.mubr.msk.bf16.vlgmr.msra.gmra.mrb[0].mxu1 %vm368_vm0, %v338_v17  ;;  %v324_v35 = vld [vmem:[%s1600_s10 + $0xd8] sm:$0xff]  ;;  %v310_v37 = vld [vmem:[%s1600_s10 + $0x68] sm:$0xff]  ;;  %v325_v38 = vld [vmem:[%s1600_s10 + $0xe0] sm:$0xff]  ;;  %v334_v40 = vpack.c.bf16 %v308_v33, %v307_v32  ;;  %p1275_p1 = pnand %p1274_p8, %p1779_p12 }
  0x76   : > { %1004 = vmatprep.mubr.msk.bf16.mxu0 %vm368_vm0, %v331_v18  ;;  %1020 = vmatprep.mubr.msk.bf16.mxu1 %vm368_vm0, %v339_v19  ;;  %v326_v39 = vld [vmem:[%s1600_s10 + $0xe8] sm:$0xff]  ;;  %v342_v41 = vpack.c.bf16 %v324_v35, %v323_v34  ;;  %v335_v42 = vpack.c.bf16 %v310_v37, %v309_v36  ;;  %v311_v44 = vld [vmem:[%s1600_s10 + $0x70] sm:$0xff]  ;;  %v312_v45 = vld [vmem:[%s1600_s10 + $0x78] sm:$0xff] }
  0x77   : > { %v343_v43 = vpack.c.bf16 %v326_v39, %v325_v38  ;;  %v327_v46 = vld [vmem:[%s1600_s10 + $0xf0] sm:$0xff]  ;;  %v328_v47 = vld [vmem:[%s1600_s10 + $0xf8] sm:$0xff]  ;;  %v336_v48 = vpack.c.bf16 %v312_v45, %v311_v44  ;;  %v714_v54 = vld [vmem:[#allocation8 + $0x10] sm:$0xff]  ;;  %p1276_p10 = pneg %p1275_p1  ;;  %s1277_s10 = sshll.u32 %s1371_s21, 4  ;;  %s1278_s10 = int_to_ptr.vmem [resolvable:$false] %s1277_s10 }
  0x78   : > { %v344_v49 = vpack.c.bf16 %v328_v47, %v327_v46  ;;  %v712_v50 = vld [vmem:[#allocation8] sm:$0xff]  ;;  %v713_v51 = vld [vmem:[#allocation8 + $0x8] sm:$0xff]  ;;  %v715_v55 = vld [vmem:[#allocation8 + $0x18] sm:$0xff]  ;;  %s1279_s26 = scalar_lea.vmem %s1278_s10, 256  ;;  %p1280_p3 = scmp.lt.s32.totalorder %s1710_s13, %s1278_s10 }
  0x79   : > { %v1068_v52 = vpack.c.bf16 %v713_v51, %v712_v50  ;;  %v1071_v56 = vpack.c.bf16 %v715_v55, %v714_v54  ;;  %v716_v57 = vld [vmem:[#allocation8 + $0x20] sm:$0xff]  ;;  %v717_v58 = vld [vmem:[#allocation8 + $0x28] sm:$0xff]  ;;  %v718_v60 = vld [vmem:[#allocation8 + $0x30] sm:$0xff]  ;;  %p1281_p5 = scmp.lt.s32.totalorder %s1279_s26, %s1273_s15 }
  0x7a   : > { %v1074_v59 = vpack.c.bf16 %v717_v58, %v716_v57  ;;  %v719_v61 = vld [vmem:[#allocation8 + $0x38] sm:$0xff]  ;;  %v720_v63 = vld [vmem:[#allocation8 + $0x40] sm:$0xff]  ;;  %v721_v0 = vld [vmem:[#allocation8 + $0x48] sm:$0xff] }
  0x7b   : > { %1069 = vmatpush3.bf16.msra.mxu1 %v1068_v52  ;;  %v1077_v62 = vpack.c.bf16 %v719_v61, %v718_v60  ;;  %v1080_v1 = vpack.c.bf16 %v721_v0, %v720_v63  ;;  %v722_v2 = vld [vmem:[#allocation8 + $0x50] sm:$0xff]  ;;  %v723_v3 = vld [vmem:[#allocation8 + $0x58] sm:$0xff]  ;;  %v724_v5 = vld [vmem:[#allocation8 + $0x60] sm:$0xff]  ;;  %p1282_p9 = por %p1281_p5, %p1280_p3 }
  0x7c   : > { %1070 = vmatprep.subr.bf16.mxu1 %v1368_v53  ;;  %v1083_v4 = vpack.c.bf16 %v723_v3, %v722_v2  ;;  %v725_v6 = vld [vmem:[#allocation8 + $0x68] sm:$0xff]  ;;  %v726_v8 = vld [vmem:[#allocation8 + $0x70] sm:$0xff]  ;;  %v727_v9 = vld [vmem:[#allocation8 + $0x78] sm:$0xff] }
  0x7d   : > { %1005 = vmatmul.mubr.msk.bf16.gmra.mrb[4].mxu0 %vm368_vm0, %v332_v28  ;;  %1021 = vmatmul.mubr.msk.bf16.gmra.mrb[4].mxu1 %vm368_vm0, %v340_v29  ;;  %v1086_v7 = vpack.c.bf16 %v725_v6, %v724_v5  ;;  %v1089_v10 = vpack.c.bf16 %v727_v9, %v726_v8  ;;  %v1661_v12 = vld [vmem:[%s1759_s2] ss:$0 sm:$0xff]  ;;  %p1283_p11 = pnand %p1282_p9, %p1276_p10 }
  0x7e   : > { %1008 = vmatprep.mubr.msk.bf16.mxu0 %vm368_vm0, %v333_v30  ;;  %1024 = vmatprep.mubr.msk.bf16.mxu1 %vm368_vm0, %v341_v31 }
  0x7f   : > { %1072 = vmatpush3.bf16.msra.mxu1 %v1071_v56 }
  0x80   : > { %1073 = vmatprep.subr.bf16.mxu1 %v1368_v53 }
  0x83   : > { %1075 = vmatpush3.bf16.msra.mxu1 %v1074_v59 }
  0x84   : > { %1076 = vmatprep.subr.bf16.mxu1 %v1368_v53 }
  0x85   : > { %1009 = vmatmul.mubr.msk.bf16.gmra.mrb[8].mxu0 %vm368_vm0, %v334_v40  ;;  %1025 = vmatmul.mubr.msk.bf16.gmra.mrb[8].mxu1 %vm368_vm0, %v342_v41 }
  0x86   : > { %1012 = vmatprep.mubr.msk.bf16.mxu0 %vm368_vm0, %v335_v42  ;;  %1028 = vmatprep.mubr.msk.bf16.mxu1 %vm368_vm0, %v343_v43 }
  0x87   : > { %1078 = vmatpush3.bf16.msra.mxu1 %v1077_v62 }
  0x88   : > { %1079 = vmatprep.subr.bf16.mxu1 %v1368_v53 }
  0x8b   : > { %1081 = vmatpush3.bf16.msra.mxu1 %v1080_v1 }
  0x8c   : > { %1082 = vmatprep.subr.bf16.mxu1 %v1368_v53 }
  0x8d   : > { %1013 = vmatmul.mubr.msk.bf16.gmra.mrb[12].mxu0 %vm368_vm0, %v336_v48  ;;  %1029 = vmatmul.mubr.msk.bf16.gmra.mrb[12].mxu1 %vm368_vm0, %v344_v49 }
  0x8e   : > { %1064 = vmatprep.mubr.msk.f32.mxu1 %vm1369_vm1, %v1370_v11 }
  0x8f   : > { %1084 = vmatpush3.bf16.msra.mxu1 %v1083_v4 }
  0x90   : > { %1085 = vmatprep.subr.bf16.mxu1 %v1368_v53 }
  0x93   : > { %1087 = vmatpush3.bf16.msra.mxu1 %v1086_v7 }
  0x94   : > { %1088 = vmatprep.subr.bf16.mxu1 %v1368_v53 }
  0x97   : > { %1090 = vmatpush3.bf16.msra.mxu1 %v1089_v10 }
 0x148   : > { %v1002_v13 = vpop.f32.mrb[0].mxu0  ;;  %v1018_v14 = vpop.f32.mrb[0].mxu1 }
 0x149   : > { %v524_v15 = vadd.f32 %v1018_v14, %v1661_v12  ;;  %v451_v16 = vpop.f32.mrb[1].mxu0  ;;  %v515_v17 = vpop.f32.mrb[1].mxu1  ;;  %v460_v24 = vadd.f32 %v1002_v13, %v1661_v12 }
 0x14a   : > { %v452_v18 = vadd.f32 %v1661_v12, %v451_v16  ;;  %v516_v19 = vadd.f32 %v1661_v12, %v515_v17  ;;  %v1003_v20 = vpop.f32.mrb[2].mxu0  ;;  %v1019_v21 = vpop.f32.mrb[2].mxu1 }
 0x14b   : > { %v454_v22 = vpop.f32.mrb[3].mxu0  ;;  %v518_v23 = vpop.f32.mrb[3].mxu1  ;;  %v596_v28 = vmax.f32 %v524_v15, 0.0  ;;  %v463_v29 = vadd.f32 %v1003_v20, %v1661_v12  ;;  %v527_v31 = vadd.f32 %v1019_v21, %v1661_v12  ;;  %v580_v34 = vmax.f32 %v460_v24, 0.0 }
 0x14c   : > { %v594_v25 = vmax.f32 %v516_v19, 0.0  ;;  %v455_v26 = vadd.f32 %v1661_v12, %v454_v22  ;;  %v519_v27 = vadd.f32 %v1661_v12, %v518_v23  ;;  %v578_v30 = vmax.f32 %v452_v18, 0.0 }
 0x14d   : > { %v581_v39 = vmax.f32 %v463_v29, 0.0  ;;  %v597_v42 = vmax.f32 %v527_v31, 0.0 }
 0x14e   : > { %v579_v32 = vmax.f32 %v455_v26, 0.0  ;;  %v595_v33 = vmax.f32 %v519_v27, 0.0 }
 0x150   : > { %v611_v35 = vadd.f32 %v579_v32, %v578_v30  ;;  %v647_v36 = vadd.f32 %v595_v33, %v594_v25  ;;  %v1006_v37 = vpop.f32.mrb[4].mxu0  ;;  %v1022_v38 = vpop.f32.mrb[4].mxu1 }
 0x151   : > { %v467_v40 = vpop.f32.mrb[5].mxu0  ;;  %v531_v41 = vpop.f32.mrb[5].mxu1  ;;  %v540_v48 = vadd.f32 %v1022_v38, %v1661_v12  ;;  %v476_v54 = vadd.f32 %v1006_v37, %v1661_v12 }
 0x152   : > { %v612_v43 = vadd.f32 %v611_v35, %v580_v34  ;;  %v648_v44 = vadd.f32 %v647_v36, %v596_v28  ;;  %v532_v45 = vadd.f32 %v1661_v12, %v531_v41  ;;  %v1007_v46 = vpop.f32.mrb[6].mxu0  ;;  %v1023_v47 = vpop.f32.mrb[6].mxu1  ;;  %v468_v49 = vadd.f32 %v1661_v12, %v467_v40 }
 0x153   : > { %v470_v50 = vpop.f32.mrb[7].mxu0  ;;  %v534_v51 = vpop.f32.mrb[7].mxu1  ;;  %v479_v59 = vadd.f32 %v1007_v46, %v1661_v12  ;;  %v543_v60 = vadd.f32 %v1023_v47, %v1661_v12  ;;  %v600_v61 = vmax.f32 %v540_v48, 0.0  ;;  %v584_v4 = vmax.f32 %v476_v54, 0.0 }
 0x154   : > { %v613_v52 = vadd.f32 %v612_v43, %v581_v39  ;;  %v1674_v53 = vadd.f32 %v648_v44, %v597_v42  ;;  %v598_v55 = vmax.f32 %v532_v45, 0.0  ;;  %v471_v56 = vadd.f32 %v1661_v12, %v470_v50 }
 0x155   : > { %v535_v57 = vadd.f32 %v1661_v12, %v534_v51  ;;  %v582_v62 = vmax.f32 %v468_v49, 0.0  ;;  %v585_v9 = vmax.f32 %v479_v59, 0.0  ;;  %v601_v10 = vmax.f32 %v543_v60, 0.0 }
 0x156   : > { %v614_v58 = vrot.slane %v613_v52, 4  ;;  %v583_v63 = vmax.f32 %v471_v56, 0.0  ;;  %v650_v38 = vrot.slane %v1674_v53, 4 }
 0x157   : > { %v599_v0 = vmax.f32 %v535_v57, 0.0 }
 0x158   : > { %v615_v1 = vadd.f32 %v614_v58, %v613_v52  ;;  %v1010_v2 = vpop.f32.mrb[8].mxu0  ;;  %v1026_v3 = vpop.f32.mrb[8].mxu1  ;;  %v620_v5 = vadd.f32 %v583_v63, %v582_v62 }
 0x159   : > { %v656_v6 = vadd.f32 %v599_v0, %v598_v55  ;;  %v483_v7 = vpop.f32.mrb[9].mxu0  ;;  %v547_v8 = vpop.f32.mrb[9].mxu1  ;;  %v556_v11 = vadd.f32 %v1026_v3, %v1661_v12  ;;  %v492_v24 = vadd.f32 %v1010_v2, %v1661_v12 }
 0x15a   : > { %v548_v13 = vadd.f32 %v1661_v12, %v547_v8  ;;  %v1011_v14 = vpop.f32.mrb[10].mxu0  ;;  %v1027_v15 = vpop.f32.mrb[10].mxu1  ;;  %v616_v16 = vrot.slane %v615_v1, 2  ;;  %v621_v17 = vadd.f32 %v620_v5, %v584_v4  ;;  %v484_v19 = vadd.f32 %v1661_v12, %v483_v7 }
 0x15b   : > { %v657_v18 = vadd.f32 %v656_v6, %v600_v61  ;;  %v486_v20 = vpop.f32.mrb[11].mxu0  ;;  %v550_v21 = vpop.f32.mrb[11].mxu1  ;;  %v604_v30 = vmax.f32 %v556_v11, 0.0  ;;  %v495_v32 = vadd.f32 %v1011_v14, %v1661_v12  ;;  %v559_v33 = vadd.f32 %v1027_v15, %v1661_v12 }
 0x15c   : > { %v622_v22 = vadd.f32 %v621_v17, %v585_v9  ;;  %v602_v25 = vmax.f32 %v548_v13, 0.0  ;;  %v487_v26 = vadd.f32 %v1661_v12, %v486_v20  ;;  %v551_v27 = vadd.f32 %v1661_v12, %v550_v21 }
 0x15d   : > { %v658_v23 = vadd.f32 %v657_v18, %v601_v10  ;;  %v617_v28 = vadd.f32 %v616_v16, %v615_v1  ;;  %v586_v31 = vmax.f32 %v484_v19, 0.0  ;;  %v588_v42 = vmax.f32 %v492_v24, 0.0 }
 0x15e   : > { %v623_v29 = vrot.slane %v622_v22, 4  ;;  %v587_v34 = vmax.f32 %v487_v26, 0.0  ;;  %v603_v35 = vmax.f32 %v551_v27, 0.0  ;;  %v589_v55 = vmax.f32 %v495_v32, 0.0 }
 0x15f   : > { %v618_v48 = vrot.slane %v617_v28, 1  ;;  %v605_v56 = vmax.f32 %v559_v33, 0.0  ;;  %v659_v60 = vrot.slane %v658_v23, 4  ;;  %v651_v19 = vadd.f32 %v650_v38, %v1674_v53 }
 0x160   : > { %v1014_v36 = vpop.f32.mrb[12].mxu0  ;;  %v1030_v37 = vpop.f32.mrb[12].mxu1  ;;  %v624_v39 = vadd.f32 %v623_v29, %v622_v22  ;;  %v629_v43 = vadd.f32 %v587_v34, %v586_v31  ;;  %v665_v44 = vadd.f32 %v603_v35, %v602_v25 }
 0x161   : > { %v499_v40 = vpop.f32.mrb[13].mxu0  ;;  %v563_v41 = vpop.f32.mrb[13].mxu1  ;;  %v572_v50 = vadd.f32 %v1030_v37, %v1661_v12  ;;  %v508_v61 = vadd.f32 %v1014_v36, %v1661_v12  ;;  %v619_v11 = vadd.f32 %v618_v48, %v617_v28  ;;  %v660_v21 = vadd.f32 %v659_v60, %v658_v23 }
 0x162   : > { %v564_v45 = vadd.f32 %v1661_v12, %v563_v41  ;;  %v1015_v46 = vpop.f32.mrb[14].mxu0  ;;  %v1031_v47 = vpop.f32.mrb[14].mxu1  ;;  %v625_v49 = vrot.slane %v624_v39, 2  ;;  %v500_v51 = vadd.f32 %v1661_v12, %v499_v40  ;;  %v630_v57 = vadd.f32 %v629_v43, %v588_v42 }
 0x163   : > { %v502_v52 = vpop.f32.mrb[15].mxu0  ;;  %v566_v54 = vpop.f32.mrb[15].mxu1  ;;  %v666_v58 = vadd.f32 %v665_v44, %v604_v30  ;;  %v608_v4 = vmax.f32 %v572_v50, 0.0  ;;  %v511_v6 = vadd.f32 %v1015_v46, %v1661_v12  ;;  %v575_v8 = vadd.f32 %v1031_v47, %v1661_v12 }
 0x164   : > { %v626_v59 = vadd.f32 %v625_v49, %v624_v39  ;;  %v606_v62 = vmax.f32 %v564_v45, 0.0  ;;  %v631_v63 = vadd.f32 %v630_v57, %v589_v55  ;;  %v503_v1 = vadd.f32 %v1661_v12, %v502_v52 }
 0x165   : > { %v667_v0 = vadd.f32 %v666_v58, %v605_v56  ;;  %v567_v2 = vadd.f32 %v1661_v12, %v566_v54  ;;  %v590_v5 = vmax.f32 %v500_v51, 0.0  ;;  %v592_v16 = vmax.f32 %v508_v61, 0.0 }
 0x166   : > { %v627_v3 = vrot.slane %v626_v59, 1  ;;  %v632_v7 = vrot.slane %v631_v63, 4  ;;  %v591_v9 = vmax.f32 %v503_v1, 0.0  ;;  %v593_v22 = vmax.f32 %v511_v6, 0.0 }
 0x167   : > { %v607_v10 = vmax.f32 %v567_v2, 0.0  ;;  %v668_v14 = vrot.slane %v667_v0, 4  ;;  %v609_v25 = vmax.f32 %v575_v8, 0.0  ;;  %v652_v31 = vrot.slane %v651_v19, 2 }
 0x168   : > { %v628_v13 = vadd.f32 %v627_v3, %v626_v59  ;;  %v633_v15 = vadd.f32 %v632_v7, %v631_v63  ;;  %v638_v17 = vadd.f32 %v591_v9, %v590_v5  ;;  %v661_v32 = vrot.slane %v660_v21, 2 }
 0x169   : > { %v674_v18 = vadd.f32 %v607_v10, %v606_v62  ;;  %v669_v12 = vadd.f32 %v668_v14, %v667_v0  ;;  %v653_v23 = vadd.f32 %v652_v31, %v651_v19  ;;  %v954_v62 = vld [vmem:[%s1761_s4] ss:$0 sm:$0xff] }
 0x16a   : > { %v692_v20 = vsel %vm691_vm2, %v628_v13, %v619_v11  ;;  %v634_v24 = vrot.slane %v633_v15, 2  ;;  %v639_v26 = vadd.f32 %v638_v17, %v592_v16  ;;  %v662_v39 = vadd.f32 %v661_v32, %v660_v21 }
 0x16b   : > { %v675_v27 = vadd.f32 %v674_v18, %v608_v4  ;;  %v670_v36 = vrot.slane %v669_v12, 2  ;;  %v654_v46 = vrot.slane %v653_v23, 1 }
 0x16c   : > { %v635_v29 = vadd.f32 %v634_v24, %v633_v15  ;;  %v640_v30 = vadd.f32 %v639_v26, %v593_v22  ;;  %v663_v47 = vrot.slane %v662_v39, 1 }
 0x16d   : > { %v676_v28 = vadd.f32 %v675_v27, %v609_v25  ;;  %v671_v43 = vadd.f32 %v670_v36, %v669_v12  ;;  %v655_v52 = vadd.f32 %v654_v46, %v653_v23 }
 0x16e   : > { %v636_v33 = vrot.slane %v635_v29, 1  ;;  %v641_v34 = vrot.slane %v640_v30, 4  ;;  %v664_v54 = vadd.f32 %v663_v47, %v662_v39 }
 0x16f   : > { %v677_v35 = vrot.slane %v676_v28, 4  ;;  %v672_v49 = vrot.slane %v671_v43, 1 }
 0x170   : > { %v637_v53 = vadd.f32 %v636_v33, %v635_v29  ;;  %v642_v37 = vadd.f32 %v641_v34, %v640_v30 }
 0x171   : > { %v678_v38 = vadd.f32 %v677_v35, %v676_v28  ;;  %v673_v56 = vadd.f32 %v672_v49, %v671_v43 }
 0x172   : > { %v643_v40 = vrot.slane %v642_v37, 2  ;;  %v694_v42 = vsel %vm693_vm3, %v637_v53, %v692_v20 }
 0x173   : > { %v679_v41 = vrot.slane %v678_v38, 2 }
 0x174   : > { %v644_v44 = vadd.f32 %v643_v40, %v642_v37 }
 0x175   : > { %v680_v45 = vadd.f32 %v679_v41, %v678_v38 }
 0x176   : > { %v645_v48 = vrot.slane %v644_v44, 1 }
 0x177   : > { %v681_v51 = vrot.slane %v680_v45, 1 }
 0x178   : > { %v646_v50 = vadd.f32 %v645_v48, %v644_v44 }
 0x179   : > { %v682_v58 = vadd.f32 %v681_v51, %v680_v45 }
 0x17a   : > { %v696_v55 = vsel %vm695_vm4, %v646_v50, %v694_v42 }
 0x17b   : > { %v698_v57 = vsel %vm697_vm5, %v655_v52, %v696_v55 }
 0x17c   : > { %v700_v59 = vsel %vm699_vm6, %v664_v54, %v698_v57 }
 0x17d   : > { %v702_v60 = vsel %vm701_vm7, %v673_v56, %v700_v59 }
 0x17e   : > { %v704_v61 = vsel %vm703_vm8, %v682_v58, %v702_v60 }
 0x17f   : > { %1065 = vmatmul.mubr.f32.vlgmr.msra.gmra.mrb[16].mxu1 %v704_v61 }
 0x252   : > { %v801_v63 = vpop.f32.mrb[16].mxu1 }
 0x253   : > { %v802_v0 = vadd.f32 %v954_v62, %v801_v63  ;;  %v1066_v1 = vpop.f32.mrb[17].mxu1 }
 0x255   : > { %805 = vst [vmem:[%s288_s11] sm:$0xff] %v802_v0 }
 0x256   : > { %1286 = shalt.err (!%p1283_p11)
}
 0x257   : > { %s1287_s24 = scalar_lea.hbm %s1708_s14, 128  ;;  %s1291_s25 = scalar_lea.hbm %s1762_s5, 256 }
 0x258   : > { %p1288_p0 = scmp.ne.s32.totalorder %s1708_s14, %s1287_s24  ;;  %p1292_p6 = scmp.lt.u32.totalorder %s1708_s14, %s1762_s5 }
 0x259   : > { %p1293_p7 = scmp.lt.u32.totalorder %s1291_s25, %s1287_s24  ;;  %p1295_p8 = scmp.lt.u32.totalorder %s1287_s24, %s1708_s14 }
 0x25a   : > { %p1289_p4 = pnand %p1288_p0, %p1779_p12 }
 0x25b   : > { %p1294_p2 = por %p1293_p7, %p1292_p6 }
 0x25c   : > { %p1290_p13 = pneg %p1289_p4 }
 0x25d   : > { %p1296_p1 = por %p1295_p8, %p1294_p2 }
 0x25f   : > { %p1297_p10 = pnand %p1296_p1, %p1290_p13 }
 0x261   : > { %1300 = shalt.err (!%p1297_p10)
}
 0x262   : > { %1105 = dma.vmem_to_hbm [thread:$0]  (%p1779_p12), %s1710_s13, 128, %s1708_s14, %s807_s27  }
 0x263 PF: > { %s832_s11 = sand.u32 1, %s1339_s18   ;;  %p1780_p3 = scmp.ne.s32.totalorder %s1771_s29, 0 }
 0x264   : > { %p1781_p5 = scmp.ge.s32.totalorder %s1359_s23, 2  ;;  %s833_s16 = scalar_lea.sflag [#allocation5], %s832_s11 }
 0x266   : > { %p1119_p9 = pnand %p1781_p5, %p1780_p3 }
 0x268   : > { %1334 = dma.done.wait (!%p1119_p9), %s833_s16, 128  }
 0x269   : > { %1336 = vsyncadd (!%p1119_p9), %s833_s16, 4294967168  ;;  %s22_s23 = sadd.s32 1, %s1359_s23   ;;  %s1782_s18 = smov %s1343_s19 }
 0x26a   : > { %p19_p11 = scmp.ge.s32.totalorder %s22_s23, 4   ;;  %s1783_s19 = smov %s1347_s20 }
 0x26b   : > { %s1784_s20 = smov %s1547_s17  ;;  %s1785_s21 = smov %s1355_s22 }
 0x26c   : > { %s1786_s22 = smov %s1788_s12  ;;  %21 = sbr.rel (!%p19_p11) target bundleno = 7 (0x7), region = 101 }
 0x273   :  { %838 = vsyncpa [#allocation4], 1 }
 0x274   :  { %840 = vsyncpa [#allocation4 + $0x1], 1 }
 0x275   :  { %841 = vsyncpa [#allocation7], 1 }
 0x276   :  { %842 = vsyncpa [#allocation5], 1 }
 0x277   :  { %844 = vsyncpa [#allocation5 + $0x1], 1 }

// kernel: tpu_custom_call.1
= control target key start
LH: loop header
LB: loop body
LE: loop exit
PB: predicated region body
PF: predicated region fallthrough
CT: control target
= control target key end

     0   :  { %10 = vsyncpa [#allocation4], 0  ;;  %s1757_s0 = inlined_call_operand.hbm [shape: f32[16,32,32], index: 0, kind: input, shape index: {}]   ;;  %s1758_s1 = inlined_call_operand.hbm [shape: bf16[32,128], index: 1, kind: input, shape index: {}]   ;;  %s1759_s2 = inlined_call_operand.vmem [shape: f32[1,128], index: 2, kind: input, shape index: {}]   ;;  %s1760_s3 = inlined_call_operand.hbm [shape: f32[128,128], index: 3, kind: input, shape index: {}]   ;;  %s1761_s4 = inlined_call_operand.vmem [shape: f32[1,128], index: 4, kind: input, shape index: {}]   ;;  %s1762_s5 = inlined_call_operand.hbm [shape: f32[16,128], index: 5, kind: output, shape index: {}]  }
   0x1   :  { %12 = vsyncpa [#allocation4 + $0x1], 0 }
   0x2   :  { %13 = vsyncpa [#allocation7], 0 }
   0x3   :  { %14 = vsyncpa [#allocation5], 0 }
   0x4   :  { %16 = vsyncpa [#allocation5 + $0x1], 0  ;;  %s1402_s18 = smov 0   ;;  %s1404_s19 = smov 0  }
   0x5   :  { %s1406_s20 = smov 0   ;;  %s1408_s21 = smov 0  }
   0x6   :  { %s1410_s22 = smov 0   ;;  %s1412_s23 = smov 0  }
   0x7 LB: > { %s920_s24 = sadd.s32 4294967295, %s1359_s23   ;;  %s921_s25 = sadd.s32 4294967294, %s1359_s23   ;;  %s1359_s23 = sphi %s1412_s23, %s22_s23   ;;  %s1355_s22 = sphi %s1410_s22, %s1786_s22   ;;  %s1351_s21 = sphi %s1408_s21, %s1785_s21   ;;  %s1347_s20 = sphi %s1406_s20, %s1784_s20   ;;  %s1343_s19 = sphi %s1404_s19, %s1783_s19   ;;  %s1339_s18 = sphi %s1402_s18, %s1782_s18  }
   0x8   : > { %p56_p0 = scmp.ne.s32.totalorder %s1343_s19, %s1339_s18  ;;  %p1436_p1 = scmp.eq.s32.totalorder %s920_s24, 0 }
   0x9   : > { %p1440_p2 = scmp.eq.s32.totalorder %s920_s24, 1  ;;  %p170_p3 = scmp.eq.s32.totalorder %s921_s25, 1 }
   0xa   : > { %s1768_s26 = scalar_select %p1436_p1, 1, 0 }
   0xb   : > { %p1446_p4 = por %p1436_p1, %p56_p0  ;;  %p922_p5 = scmp.ge.s32.totalorder %s1359_s23, 1 }
   0xc   : > { %p1451_p6 = por %p170_p3, %p56_p0  ;;  %p177_p7 = scmp.lt.s32.totalorder %s1359_s23, 3 }
   0xd   : > { %s1770_s28 = scalar_select %p1446_p4, 1, 0 }
   0xe   : > { %s1771_s29 = scalar_select %p1451_p6, 1, 0 }
   0xf   : > { %p1456_p8 = pnand %p922_p5, %p177_p7  ;;  %s1361_s6 = smov [#allocation6]  }
  0x10   : > { %s189_s7 = sshll.u32 %s1361_s6, 4  ;;  %s1362_s9 = smov [#allocation8]   ;;  %s1460_s7 = int_to_ptr.vmem [resolvable:$true] %s189_s7 }
  0x11   : > { %p1107_p9 = pneg %p1456_p8  ;;  %s205_s10 = sshll.u32 %s1362_s9, 4  ;;  %s1471_s10 = int_to_ptr.vmem [resolvable:$true] %s205_s10 }
  0x12   : > { %s1187_s13 = scalar_lea.hbm %s1758_s1, 256 }
  0x13   : > { %p1467_p11 = pnand %p1107_p9, %p1436_p1  ;;  %p1188_p12 = scmp.ne.s32.totalorder %s1758_s1, %s1187_s13 }
  0x14   : > { %p1194_p5 = scmp.lt.u32.totalorder %s1187_s13, %s1758_s1 }
  0x15   : > { %p1189_p13 = pneg %p1467_p11 }
  0x17   : > { %p1190_p0 = pnand %p1189_p13, %p1188_p12 }
  0x19   : > { %p1191_p3 = pneg %p1190_p0 }
  0x1b   : > { %p1196_p7 = pnand %p1194_p5, %p1191_p3 }
  0x1d   : > { %1199 = shalt.err (!%p1196_p7)
}
  0x1e   : > { %s1200_s24 = scalar_lea.vmem %s1460_s7, 256  ;;  %p1208_p1 = scmp.lt.s32.totalorder %s1460_s7, %s1460_s7 }
  0x1f   : > { %p1201_p9 = scmp.ne.s32.totalorder %s1460_s7, %s1200_s24  ;;  %p1209_p12 = scmp.lt.s32.totalorder %s1200_s24, %s1200_s24 }
  0x21   : > { %p1203_p10 = pnand %p1201_p9, %p1189_p13  ;;  %p1210_p0 = por %p1209_p12, %p1208_p1 }
  0x23   : > { %p1204_p6 = pneg %p1203_p10 }
  0x25   : > { %p1211_p4 = pnand %p1210_p0, %p1204_p6 }
  0x27   : > { %1214 = shalt.err (!%p1211_p4)
}
  0x28   : > { %s1363_s25 = smov 64   ;;  %s1364_s6 = smov 4  }
  0x29   : > { %1110 = dma.hbm_to_vmem [thread:$0]  (!%p1467_p11), %s1758_s1, 256, %s1460_s7, [#allocation7], %s1363_s25, %s1363_s25, %s1364_s6  }
  0x2a   : > { %s1215_s14 = scalar_lea.hbm %s1760_s3, 2048 }
  0x2b   : > { %p1216_p1 = scmp.ne.s32.totalorder %s1760_s3, %s1215_s14  ;;  %p1222_p10 = scmp.lt.u32.totalorder %s1215_s14, %s1760_s3 }
  0x2d   : > { %p1218_p4 = pnand %p1216_p1, %p1189_p13 }
  0x2f   : > { %p1219_p6 = pneg %p1218_p4 }
  0x31   : > { %p1224_p3 = pnand %p1222_p10, %p1219_p6 }
  0x33   : > { %1227 = shalt.err (!%p1224_p3)
}
  0x34   : > { %s1228_s7 = scalar_lea.vmem %s1471_s10, 2048  ;;  %p1236_p12 = scmp.lt.s32.totalorder %s1471_s10, %s1471_s10 }
  0x35   : > { %p1229_p5 = scmp.ne.s32.totalorder %s1471_s10, %s1228_s7  ;;  %p1237_p0 = scmp.lt.s32.totalorder %s1228_s7, %s1228_s7 }
  0x37   : > { %p1231_p7 = pnand %p1229_p5, %p1189_p13  ;;  %p1238_p1 = por %p1237_p0, %p1236_p12 }
  0x39   : > { %p1232_p9 = pneg %p1231_p7 }
  0x3b   : > { %p1239_p4 = pnand %p1238_p1, %p1232_p9 }
  0x3d   : > { %1242 = shalt.err (!%p1239_p4)
}
  0x3e   : > { %s1766_s25 = smov 128   ;;  %s1366_s6 = smov 8  }
  0x3f   : > { %1113 = dma.hbm_to_vmem [thread:$0]  (!%p1467_p11), %s1760_s3, 2048, %s1471_s10, [#allocation7], %s1766_s25, %s1766_s25, %s1366_s6  }
  0x40   : > { %s34_s12 = sadd.s32 1, %s1355_s22  ;;  %s43_s13 = sadd.s32 1, %s1347_s20 }
  0x41   : > { %p36_p13 = scmp.ge.s32.totalorder %s34_s12, 2  ;;  %p50_p6 = scmp.ne.s32.totalorder %s1347_s20, %s1343_s19 }
  0x42   : > { %p51_p10 = scmp.eq.s32.totalorder %s1359_s23, 0  ;;  %p1124_p3 = scmp.lt.s32.totalorder %s1359_s23, 2 }
  0x43   : > { %s1788_s12 = smov (%p36_p13, %s34_s12), 0  ;;  %p1538_p7 = por %p1440_p2, %p50_p6 }
  0x44   : > { %p52_p5 = por %p51_p10, %p50_p6  ;;  %s38_s14 = ssub.s32 %s1355_s22, %s1788_s12 }
  0x45   : > { %s1774_s8 = scalar_select %p1538_p7, 1, 0 }
  0x46   : > { %s222_s15 = sand.u32 1, %s1347_s20   ;;  %p41_p9 = scmp.eq.s32.totalorder %s38_s14, 0 }
  0x47   : > { %s926_s10 = sshll.u32 %s222_s15, 8  ;;  %s960_s16 = sshll.u32 %s1355_s22, 12 }
  0x48   : > { %s1547_s17 = scalar_select %p41_p9, %s1347_s20, %s43_s13  }
  0x49   : > { %s1552_s9 = scalar_lea.hbm %s1757_s0, %s960_s16  ;;  %s226_s27 = scalar_lea.vmem [#allocation3], %s926_s10 }
  0x4a   : > { %s236_s11 = sshll.u32 %s226_s27, 4  ;;  %p1556_p2 = pnand %p1124_p3, %p52_p5  ;;  %s1560_s11 = int_to_ptr.vmem [resolvable:$true] %s236_s11 }
  0x4b   : > { %s1562_s13 = scalar_lea.sflag [#allocation4], %s222_s15  ;;  %s1243_s14 = scalar_lea.hbm %s1552_s9, 4096 }
  0x4c   : > { %p1244_p11 = scmp.ne.s32.totalorder %s1552_s9, %s1243_s14  ;;  %p1245_p12 = pneg %p1556_p2 }
  0x4d   : > { %s1248_s24 = scalar_lea.hbm %s1757_s0, 8192  ;;  %p1249_p4 = scmp.lt.u32.totalorder %s1552_s9, %s1757_s0 }
  0x4e   : > { %p1246_p0 = pnand %p1245_p12, %p1244_p11  ;;  %p1250_p13 = scmp.lt.u32.totalorder %s1248_s24, %s1243_s14 }
  0x4f   : > { %p1252_p10 = scmp.lt.u32.totalorder %s1243_s14, %s1552_s9 }
  0x50   : > { %p1247_p1 = pneg %p1246_p0  ;;  %p1251_p6 = por %p1250_p13, %p1249_p4 }
  0x52   : > { %p1253_p3 = por %p1252_p10, %p1251_p6 }
  0x54   : > { %p1254_p5 = pnand %p1253_p3, %p1247_p1 }
  0x56   : > { %1257 = shalt.err (!%p1254_p5)
}
  0x57   : > { %s1258_s15 = scalar_lea.vmem %s1560_s11, 4096  ;;  %s1367_s10 = smov [#allocation3]  }
  0x58   : > { %p1259_p9 = scmp.ne.s32.totalorder %s1560_s11, %s1258_s15  ;;  %s1263_s16 = sshll.u32 %s1367_s10, 4  ;;  %s1264_s16 = int_to_ptr.vmem [resolvable:$false] %s1263_s16 }
  0x59   : > { %s1265_s7 = scalar_lea.vmem %s1264_s16, 8192  ;;  %p1266_p7 = scmp.lt.s32.totalorder %s1560_s11, %s1264_s16 }
  0x5a   : > { %p1261_p11 = pnand %p1259_p9, %p1245_p12  ;;  %p1267_p4 = scmp.lt.s32.totalorder %s1265_s7, %s1258_s15 }
  0x5c   : > { %p1262_p0 = pneg %p1261_p11  ;;  %p1268_p13 = por %p1267_p4, %p1266_p7 }
  0x5e   : > { %p1269_p6 = pnand %p1268_p13, %p1262_p0 }
  0x60   : > { %1272 = shalt.err (!%p1269_p6)
}
  0x61   : > { %s1776_s14 = smov 128   ;;  %248 = sbr.rel (%p1456_p8) target bundleno = 611 (0x263), region = 40 }
  0x62   : > { %1117 = dma.hbm_to_vmem [thread:$0]  (!%p1556_p2), %s1552_s9, 4096, %s1560_s11, %s1562_s13, %s1776_s14, %s1776_s14, %s1366_s6  }
  0x63   : > { %s1596_s24 = sand.u32 (!%p1456_p8), 1, %s1343_s19   ;;  %p1777_p7 = scmp.ne.s32.totalorder (!%p1456_p8), %s1770_s28, 0 }
  0x64   : > { %s931_s27 = sshll.u32 (!%p1456_p8), %s1596_s24, 8  ;;  %s251_s15 = scalar_lea.sflag (!%p1456_p8), [#allocation4], %s1596_s24 }
  0x65   : > { %s1600_s10 = scalar_lea.vmem (!%p1456_p8), [#allocation3], %s931_s27 }
  0x68   : > { %1326 = dma.done.wait (%p1777_p7), %s251_s15, 4096  }
  0x69   : > { %1328 = vsyncadd (%p1777_p7), %s251_s15, 4294963200  ;;  %p1778_p2 = scmp.ne.s32.totalorder %s1768_s26, 0 }
  0x6b   : > { %1330 = dma.done.wait (%p1778_p2), [#allocation7], 2304  }
  0x6c   : > { %1332 = vsyncadd (%p1778_p2), [#allocation7], 4294964992  ;;  %v1185_v0 = vld [vmem:[#allocation6] sm:$0xff]   ;;  %v1186_v1 = vld [vmem:[#allocation6 + $0x8] sm:$0xff]   ;;  %vm368_vm0 = vcmask 261120   ;;  %v1368_v53 = vmov 0.0|0.0  }
  0x6d   : > { %996 = vmatprep.subr.bf16.mxu0 %v1185_v0  ;;  %1091 = vmatprep.subr.bf16.mxu1 %v1185_v0  ;;  %v297_v2 = vld [vmem:[%s1600_s10] sm:$0xff]  ;;  %v298_v3 = vld [vmem:[%s1600_s10 + $0x8] sm:$0xff]  ;;  %v299_v7 = vld [vmem:[%s1600_s10 + $0x10] sm:$0xff]  ;;  %vm1369_vm1 = vmmov 0   ;;  %vm691_vm2 = vcmask 1041409   ;;  %vm693_vm3 = vcmask 1042434  }
  0x6e   : > { %v313_v4 = vld [vmem:[%s1600_s10 + $0x80] sm:$0xff]  ;;  %997 = vmatpush3.bf16.msra.mxu0 %v1185_v0  ;;  %1093 = vmatpush3.bf16.msra.mxu1 %v1185_v0  ;;  %v329_v5 = vpack.c.bf16 %v298_v3, %v297_v2  ;;  %v314_v6 = vld [vmem:[%s1600_s10 + $0x88] sm:$0xff]  ;;  %v300_v8 = vld [vmem:[%s1600_s10 + $0x18] sm:$0xff]  ;;  %vm695_vm4 = vcmask 1043459   ;;  %vm697_vm5 = vcmask 1044484   ;;  %vm699_vm6 = vcmask 1045509  }
  0x6f   : > { %998 = vmatprep.subr.bf16.mxu0 %v1186_v1  ;;  %1092 = vmatprep.subr.bf16.mxu1 %v1186_v1  ;;  %v337_v9 = vpack.c.bf16 %v314_v6, %v313_v4  ;;  %v315_v10 = vld [vmem:[%s1600_s10 + $0x90] sm:$0xff]  ;;  %v316_v11 = vld [vmem:[%s1600_s10 + $0x98] sm:$0xff]  ;;  %v301_v12 = vld [vmem:[%s1600_s10 + $0x20] sm:$0xff]  ;;  %v330_v16 = vpack.c.bf16 %v300_v8, %v299_v7  ;;  %vm701_vm7 = vcmask 1046534   ;;  %vm703_vm8 = vcmask 1047559   ;;  %s934_s30 = sshll.u32 %s1596_s24, 3 }
  0x70   : > { %1000 = vmatprep.mubr.msk.bf16.mxu0 %vm368_vm0, %v329_v5  ;;  %v302_v13 = vld [vmem:[%s1600_s10 + $0x28] sm:$0xff]  ;;  %v317_v14 = vld [vmem:[%s1600_s10 + $0xa0] sm:$0xff]  ;;  %v338_v17 = vpack.c.bf16 %v316_v11, %v315_v10  ;;  %v303_v20 = vld [vmem:[%s1600_s10 + $0x30] sm:$0xff]  ;;  %v1370_v11 = vmov 0.0   ;;  %s956_s9 = sshll.u32 %s1351_s21, 7  ;;  %s288_s11 = scalar_lea.vmem [#allocation9], %s934_s30 }
  0x71   : > { %v318_v15 = vld [vmem:[%s1600_s10 + $0xa8] sm:$0xff]  ;;  %1016 = vmatprep.mubr.msk.bf16.mxu1 %vm368_vm0, %v337_v9  ;;  %v331_v18 = vpack.c.bf16 %v302_v13, %v301_v12  ;;  %v304_v21 = vld [vmem:[%s1600_s10 + $0x38] sm:$0xff]  ;;  %v319_v22 = vld [vmem:[%s1600_s10 + $0xb0] sm:$0xff]  ;;  %s820_s13 = sshll.u32 %s288_s11, 4  ;;  %s1708_s14 = scalar_lea.hbm %s1762_s5, %s956_s9  ;;  %s1710_s13 = int_to_ptr.vmem [resolvable:$true] %s820_s13 }
  0x72   : > { %999 = vmatpush3.bf16.msra.mxu0 %v1186_v1  ;;  %1094 = vmatpush3.bf16.msra.mxu1 %v1186_v1  ;;  %v339_v19 = vpack.c.bf16 %v318_v15, %v317_v14  ;;  %v320_v23 = vld [vmem:[%s1600_s10 + $0xb8] sm:$0xff]  ;;  %v305_v24 = vld [vmem:[%s1600_s10 + $0x40] sm:$0xff]  ;;  %v306_v25 = vld [vmem:[%s1600_s10 + $0x48] sm:$0xff]  ;;  %v332_v28 = vpack.c.bf16 %v304_v21, %v303_v20  ;;  %s807_s27 = scalar_lea.sflag [#allocation5], %s1596_s24  ;;  %s1273_s15 = scalar_lea.vmem %s1710_s13, 128 }
  0x73   : > { %v321_v26 = vld [vmem:[%s1600_s10 + $0xc0] sm:$0xff]  ;;  %v322_v27 = vld [vmem:[%s1600_s10 + $0xc8] sm:$0xff]  ;;  %v340_v29 = vpack.c.bf16 %v320_v23, %v319_v22  ;;  %v333_v30 = vpack.c.bf16 %v306_v25, %v305_v24  ;;  %v307_v32 = vld [vmem:[%s1600_s10 + $0x50] sm:$0xff]  ;;  %1067 = vmatprep.subr.bf16.mxu1 %v1368_v53  ;;  %p1274_p8 = scmp.ne.s32.totalorder %s1710_s13, %s1273_s15  ;;  %p1779_p12 = scmp.ne.s32.totalorder %s1774_s8, 0 }
  0x74   : > { %v341_v31 = vpack.c.bf16 %v322_v27, %v321_v26  ;;  %v308_v33 = vld [vmem:[%s1600_s10 + $0x58] sm:$0xff]  ;;  %v323_v34 = vld [vmem:[%s1600_s10 + $0xd0] sm:$0xff]  ;;  %v309_v36 = vld [vmem:[%s1600_s10 + $0x60] sm:$0xff]  ;;  %s1371_s21 = smov [#allocation9]  }
  0x75   : > { %1001 = vmatmul.mubr.msk.bf16.vlgmr.msra.gmra.mrb[0].mxu0 %vm368_vm0, %v330_v16  ;;  %1017 = vmatmul.mubr.msk.bf16.vlgmr.msra.gmra.mrb[0].mxu1 %vm368_vm0, %v338_v17  ;;  %v324_v35 = vld [vmem:[%s1600_s10 + $0xd8] sm:$0xff]  ;;  %v310_v37 = vld [vmem:[%s1600_s10 + $0x68] sm:$0xff]  ;;  %v325_v38 = vld [vmem:[%s1600_s10 + $0xe0] sm:$0xff]  ;;  %v334_v40 = vpack.c.bf16 %v308_v33, %v307_v32  ;;  %p1275_p1 = pnand %p1274_p8, %p1779_p12 }
  0x76   : > { %1004 = vmatprep.mubr.msk.bf16.mxu0 %vm368_vm0, %v331_v18  ;;  %1020 = vmatprep.mubr.msk.bf16.mxu1 %vm368_vm0, %v339_v19  ;;  %v326_v39 = vld [vmem:[%s1600_s10 + $0xe8] sm:$0xff]  ;;  %v342_v41 = vpack.c.bf16 %v324_v35, %v323_v34  ;;  %v335_v42 = vpack.c.bf16 %v310_v37, %v309_v36  ;;  %v311_v44 = vld [vmem:[%s1600_s10 + $0x70] sm:$0xff]  ;;  %v312_v45 = vld [vmem:[%s1600_s10 + $0x78] sm:$0xff] }
  0x77   : > { %v343_v43 = vpack.c.bf16 %v326_v39, %v325_v38  ;;  %v327_v46 = vld [vmem:[%s1600_s10 + $0xf0] sm:$0xff]  ;;  %v328_v47 = vld [vmem:[%s1600_s10 + $0xf8] sm:$0xff]  ;;  %v336_v48 = vpack.c.bf16 %v312_v45, %v311_v44  ;;  %v714_v54 = vld [vmem:[#allocation8 + $0x10] sm:$0xff]  ;;  %p1276_p10 = pneg %p1275_p1  ;;  %s1277_s10 = sshll.u32 %s1371_s21, 4  ;;  %s1278_s10 = int_to_ptr.vmem [resolvable:$false] %s1277_s10 }
  0x78   : > { %v344_v49 = vpack.c.bf16 %v328_v47, %v327_v46  ;;  %v712_v50 = vld [vmem:[#allocation8] sm:$0xff]  ;;  %v713_v51 = vld [vmem:[#allocation8 + $0x8] sm:$0xff]  ;;  %v715_v55 = vld [vmem:[#allocation8 + $0x18] sm:$0xff]  ;;  %s1279_s26 = scalar_lea.vmem %s1278_s10, 256  ;;  %p1280_p3 = scmp.lt.s32.totalorder %s1710_s13, %s1278_s10 }
  0x79   : > { %v1068_v52 = vpack.c.bf16 %v713_v51, %v712_v50  ;;  %v1071_v56 = vpack.c.bf16 %v715_v55, %v714_v54  ;;  %v716_v57 = vld [vmem:[#allocation8 + $0x20] sm:$0xff]  ;;  %v717_v58 = vld [vmem:[#allocation8 + $0x28] sm:$0xff]  ;;  %v718_v60 = vld [vmem:[#allocation8 + $0x30] sm:$0xff]  ;;  %p1281_p5 = scmp.lt.s32.totalorder %s1279_s26, %s1273_s15 }
  0x7a   : > { %v1074_v59 = vpack.c.bf16 %v717_v58, %v716_v57  ;;  %v719_v61 = vld [vmem:[#allocation8 + $0x38] sm:$0xff]  ;;  %v720_v63 = vld [vmem:[#allocation8 + $0x40] sm:$0xff]  ;;  %v721_v0 = vld [vmem:[#allocation8 + $0x48] sm:$0xff] }
  0x7b   : > { %1069 = vmatpush3.bf16.msra.mxu1 %v1068_v52  ;;  %v1077_v62 = vpack.c.bf16 %v719_v61, %v718_v60  ;;  %v1080_v1 = vpack.c.bf16 %v721_v0, %v720_v63  ;;  %v722_v2 = vld [vmem:[#allocation8 + $0x50] sm:$0xff]  ;;  %v723_v3 = vld [vmem:[#allocation8 + $0x58] sm:$0xff]  ;;  %v724_v5 = vld [vmem:[#allocation8 + $0x60] sm:$0xff]  ;;  %p1282_p9 = por %p1281_p5, %p1280_p3 }
  0x7c   : > { %1070 = vmatprep.subr.bf16.mxu1 %v1368_v53  ;;  %v1083_v4 = vpack.c.bf16 %v723_v3, %v722_v2  ;;  %v725_v6 = vld [vmem:[#allocation8 + $0x68] sm:$0xff]  ;;  %v726_v8 = vld [vmem:[#allocation8 + $0x70] sm:$0xff]  ;;  %v727_v9 = vld [vmem:[#allocation8 + $0x78] sm:$0xff] }
  0x7d   : > { %1005 = vmatmul.mubr.msk.bf16.gmra.mrb[4].mxu0 %vm368_vm0, %v332_v28  ;;  %1021 = vmatmul.mubr.msk.bf16.gmra.mrb[4].mxu1 %vm368_vm0, %v340_v29  ;;  %v1086_v7 = vpack.c.bf16 %v725_v6, %v724_v5  ;;  %v1089_v10 = vpack.c.bf16 %v727_v9, %v726_v8  ;;  %v1661_v12 = vld [vmem:[%s1759_s2] ss:$0 sm:$0xff]  ;;  %p1283_p11 = pnand %p1282_p9, %p1276_p10 }
  0x7e   : > { %1008 = vmatprep.mubr.msk.bf16.mxu0 %vm368_vm0, %v333_v30  ;;  %1024 = vmatprep.mubr.msk.bf16.mxu1 %vm368_vm0, %v341_v31 }
  0x7f   : > { %1072 = vmatpush3.bf16.msra.mxu1 %v1071_v56 }
  0x80   : > { %1073 = vmatprep.subr.bf16.mxu1 %v1368_v53 }
  0x83   : > { %1075 = vmatpush3.bf16.msra.mxu1 %v1074_v59 }
  0x84   : > { %1076 = vmatprep.subr.bf16.mxu1 %v1368_v53 }
  0x85   : > { %1009 = vmatmul.mubr.msk.bf16.gmra.mrb[8].mxu0 %vm368_vm0, %v334_v40  ;;  %1025 = vmatmul.mubr.msk.bf16.gmra.mrb[8].mxu1 %vm368_vm0, %v342_v41 }
  0x86   : > { %1012 = vmatprep.mubr.msk.bf16.mxu0 %vm368_vm0, %v335_v42  ;;  %1028 = vmatprep.mubr.msk.bf16.mxu1 %vm368_vm0, %v343_v43 }
  0x87   : > { %1078 = vmatpush3.bf16.msra.mxu1 %v1077_v62 }
  0x88   : > { %1079 = vmatprep.subr.bf16.mxu1 %v1368_v53 }
  0x8b   : > { %1081 = vmatpush3.bf16.msra.mxu1 %v1080_v1 }
  0x8c   : > { %1082 = vmatprep.subr.bf16.mxu1 %v1368_v53 }
  0x8d   : > { %1013 = vmatmul.mubr.msk.bf16.gmra.mrb[12].mxu0 %vm368_vm0, %v336_v48  ;;  %1029 = vmatmul.mubr.msk.bf16.gmra.mrb[12].mxu1 %vm368_vm0, %v344_v49 }
  0x8e   : > { %1064 = vmatprep.mubr.msk.f32.mxu1 %vm1369_vm1, %v1370_v11 }
  0x8f   : > { %1084 = vmatpush3.bf16.msra.mxu1 %v1083_v4 }
  0x90   : > { %1085 = vmatprep.subr.bf16.mxu1 %v1368_v53 }
  0x93   : > { %1087 = vmatpush3.bf16.msra.mxu1 %v1086_v7 }
  0x94   : > { %1088 = vmatprep.subr.bf16.mxu1 %v1368_v53 }
  0x97   : > { %1090 = vmatpush3.bf16.msra.mxu1 %v1089_v10 }
 0x148   : > { %v1002_v13 = vpop.f32.mrb[0].mxu0  ;;  %v1018_v14 = vpop.f32.mrb[0].mxu1 }
 0x149   : > { %v524_v15 = vadd.f32 %v1018_v14, %v1661_v12  ;;  %v451_v16 = vpop.f32.mrb[1].mxu0  ;;  %v515_v17 = vpop.f32.mrb[1].mxu1  ;;  %v460_v24 = vadd.f32 %v1002_v13, %v1661_v12 }
 0x14a   : > { %v452_v18 = vadd.f32 %v1661_v12, %v451_v16  ;;  %v516_v19 = vadd.f32 %v1661_v12, %v515_v17  ;;  %v1003_v20 = vpop.f32.mrb[2].mxu0  ;;  %v1019_v21 = vpop.f32.mrb[2].mxu1 }
 0x14b   : > { %v454_v22 = vpop.f32.mrb[3].mxu0  ;;  %v518_v23 = vpop.f32.mrb[3].mxu1  ;;  %v596_v28 = vmax.f32 %v524_v15, 0.0  ;;  %v463_v29 = vadd.f32 %v1003_v20, %v1661_v12  ;;  %v527_v31 = vadd.f32 %v1019_v21, %v1661_v12  ;;  %v580_v34 = vmax.f32 %v460_v24, 0.0 }
 0x14c   : > { %v594_v25 = vmax.f32 %v516_v19, 0.0  ;;  %v455_v26 = vadd.f32 %v1661_v12, %v454_v22  ;;  %v519_v27 = vadd.f32 %v1661_v12, %v518_v23  ;;  %v578_v30 = vmax.f32 %v452_v18, 0.0 }
 0x14d   : > { %v581_v39 = vmax.f32 %v463_v29, 0.0  ;;  %v597_v42 = vmax.f32 %v527_v31, 0.0 }
 0x14e   : > { %v579_v32 = vmax.f32 %v455_v26, 0.0  ;;  %v595_v33 = vmax.f32 %v519_v27, 0.0 }
 0x150   : > { %v611_v35 = vadd.f32 %v579_v32, %v578_v30  ;;  %v647_v36 = vadd.f32 %v595_v33, %v594_v25  ;;  %v1006_v37 = vpop.f32.mrb[4].mxu0  ;;  %v1022_v38 = vpop.f32.mrb[4].mxu1 }
 0x151   : > { %v467_v40 = vpop.f32.mrb[5].mxu0  ;;  %v531_v41 = vpop.f32.mrb[5].mxu1  ;;  %v540_v48 = vadd.f32 %v1022_v38, %v1661_v12  ;;  %v476_v54 = vadd.f32 %v1006_v37, %v1661_v12 }
 0x152   : > { %v612_v43 = vadd.f32 %v611_v35, %v580_v34  ;;  %v648_v44 = vadd.f32 %v647_v36, %v596_v28  ;;  %v532_v45 = vadd.f32 %v1661_v12, %v531_v41  ;;  %v1007_v46 = vpop.f32.mrb[6].mxu0  ;;  %v1023_v47 = vpop.f32.mrb[6].mxu1  ;;  %v468_v49 = vadd.f32 %v1661_v12, %v467_v40 }
 0x153   : > { %v470_v50 = vpop.f32.mrb[7].mxu0  ;;  %v534_v51 = vpop.f32.mrb[7].mxu1  ;;  %v479_v59 = vadd.f32 %v1007_v46, %v1661_v12  ;;  %v543_v60 = vadd.f32 %v1023_v47, %v1661_v12  ;;  %v600_v61 = vmax.f32 %v540_v48, 0.0  ;;  %v584_v4 = vmax.f32 %v476_v54, 0.0 }
 0x154   : > { %v613_v52 = vadd.f32 %v612_v43, %v581_v39  ;;  %v1674_v53 = vadd.f32 %v648_v44, %v597_v42  ;;  %v598_v55 = vmax.f32 %v532_v45, 0.0  ;;  %v471_v56 = vadd.f32 %v1661_v12, %v470_v50 }
 0x155   : > { %v535_v57 = vadd.f32 %v1661_v12, %v534_v51  ;;  %v582_v62 = vmax.f32 %v468_v49, 0.0  ;;  %v585_v9 = vmax.f32 %v479_v59, 0.0  ;;  %v601_v10 = vmax.f32 %v543_v60, 0.0 }
 0x156   : > { %v614_v58 = vrot.slane %v613_v52, 4  ;;  %v583_v63 = vmax.f32 %v471_v56, 0.0  ;;  %v650_v38 = vrot.slane %v1674_v53, 4 }
 0x157   : > { %v599_v0 = vmax.f32 %v535_v57, 0.0 }
 0x158   : > { %v615_v1 = vadd.f32 %v614_v58, %v613_v52  ;;  %v1010_v2 = vpop.f32.mrb[8].mxu0  ;;  %v1026_v3 = vpop.f32.mrb[8].mxu1  ;;  %v620_v5 = vadd.f32 %v583_v63, %v582_v62 }
 0x159   : > { %v656_v6 = vadd.f32 %v599_v0, %v598_v55  ;;  %v483_v7 = vpop.f32.mrb[9].mxu0  ;;  %v547_v8 = vpop.f32.mrb[9].mxu1  ;;  %v556_v11 = vadd.f32 %v1026_v3, %v1661_v12  ;;  %v492_v24 = vadd.f32 %v1010_v2, %v1661_v12 }
 0x15a   : > { %v548_v13 = vadd.f32 %v1661_v12, %v547_v8  ;;  %v1011_v14 = vpop.f32.mrb[10].mxu0  ;;  %v1027_v15 = vpop.f32.mrb[10].mxu1  ;;  %v616_v16 = vrot.slane %v615_v1, 2  ;;  %v621_v17 = vadd.f32 %v620_v5, %v584_v4  ;;  %v484_v19 = vadd.f32 %v1661_v12, %v483_v7 }
 0x15b   : > { %v657_v18 = vadd.f32 %v656_v6, %v600_v61  ;;  %v486_v20 = vpop.f32.mrb[11].mxu0  ;;  %v550_v21 = vpop.f32.mrb[11].mxu1  ;;  %v604_v30 = vmax.f32 %v556_v11, 0.0  ;;  %v495_v32 = vadd.f32 %v1011_v14, %v1661_v12  ;;  %v559_v33 = vadd.f32 %v1027_v15, %v1661_v12 }
 0x15c   : > { %v622_v22 = vadd.f32 %v621_v17, %v585_v9  ;;  %v602_v25 = vmax.f32 %v548_v13, 0.0  ;;  %v487_v26 = vadd.f32 %v1661_v12, %v486_v20  ;;  %v551_v27 = vadd.f32 %v1661_v12, %v550_v21 }
 0x15d   : > { %v658_v23 = vadd.f32 %v657_v18, %v601_v10  ;;  %v617_v28 = vadd.f32 %v616_v16, %v615_v1  ;;  %v586_v31 = vmax.f32 %v484_v19, 0.0  ;;  %v588_v42 = vmax.f32 %v492_v24, 0.0 }
 0x15e   : > { %v623_v29 = vrot.slane %v622_v22, 4  ;;  %v587_v34 = vmax.f32 %v487_v26, 0.0  ;;  %v603_v35 = vmax.f32 %v551_v27, 0.0  ;;  %v589_v55 = vmax.f32 %v495_v32, 0.0 }
 0x15f   : > { %v618_v48 = vrot.slane %v617_v28, 1  ;;  %v605_v56 = vmax.f32 %v559_v33, 0.0  ;;  %v659_v60 = vrot.slane %v658_v23, 4  ;;  %v651_v19 = vadd.f32 %v650_v38, %v1674_v53 }
 0x160   : > { %v1014_v36 = vpop.f32.mrb[12].mxu0  ;;  %v1030_v37 = vpop.f32.mrb[12].mxu1  ;;  %v624_v39 = vadd.f32 %v623_v29, %v622_v22  ;;  %v629_v43 = vadd.f32 %v587_v34, %v586_v31  ;;  %v665_v44 = vadd.f32 %v603_v35, %v602_v25 }
 0x161   : > { %v499_v40 = vpop.f32.mrb[13].mxu0  ;;  %v563_v41 = vpop.f32.mrb[13].mxu1  ;;  %v572_v50 = vadd.f32 %v1030_v37, %v1661_v12  ;;  %v508_v61 = vadd.f32 %v1014_v36, %v1661_v12  ;;  %v619_v11 = vadd.f32 %v618_v48, %v617_v28  ;;  %v660_v21 = vadd.f32 %v659_v60, %v658_v23 }
 0x162   : > { %v564_v45 = vadd.f32 %v1661_v12, %v563_v41  ;;  %v1015_v46 = vpop.f32.mrb[14].mxu0  ;;  %v1031_v47 = vpop.f32.mrb[14].mxu1  ;;  %v625_v49 = vrot.slane %v624_v39, 2  ;;  %v500_v51 = vadd.f32 %v1661_v12, %v499_v40  ;;  %v630_v57 = vadd.f32 %v629_v43, %v588_v42 }
 0x163   : > { %v502_v52 = vpop.f32.mrb[15].mxu0  ;;  %v566_v54 = vpop.f32.mrb[15].mxu1  ;;  %v666_v58 = vadd.f32 %v665_v44, %v604_v30  ;;  %v608_v4 = vmax.f32 %v572_v50, 0.0  ;;  %v511_v6 = vadd.f32 %v1015_v46, %v1661_v12  ;;  %v575_v8 = vadd.f32 %v1031_v47, %v1661_v12 }
 0x164   : > { %v626_v59 = vadd.f32 %v625_v49, %v624_v39  ;;  %v606_v62 = vmax.f32 %v564_v45, 0.0  ;;  %v631_v63 = vadd.f32 %v630_v57, %v589_v55  ;;  %v503_v1 = vadd.f32 %v1661_v12, %v502_v52 }
 0x165   : > { %v667_v0 = vadd.f32 %v666_v58, %v605_v56  ;;  %v567_v2 = vadd.f32 %v1661_v12, %v566_v54  ;;  %v590_v5 = vmax.f32 %v500_v51, 0.0  ;;  %v592_v16 = vmax.f32 %v508_v61, 0.0 }
 0x166   : > { %v627_v3 = vrot.slane %v626_v59, 1  ;;  %v632_v7 = vrot.slane %v631_v63, 4  ;;  %v591_v9 = vmax.f32 %v503_v1, 0.0  ;;  %v593_v22 = vmax.f32 %v511_v6, 0.0 }
 0x167   : > { %v607_v10 = vmax.f32 %v567_v2, 0.0  ;;  %v668_v14 = vrot.slane %v667_v0, 4  ;;  %v609_v25 = vmax.f32 %v575_v8, 0.0  ;;  %v652_v31 = vrot.slane %v651_v19, 2 }
 0x168   : > { %v628_v13 = vadd.f32 %v627_v3, %v626_v59  ;;  %v633_v15 = vadd.f32 %v632_v7, %v631_v63  ;;  %v638_v17 = vadd.f32 %v591_v9, %v590_v5  ;;  %v661_v32 = vrot.slane %v660_v21, 2 }
 0x169   : > { %v674_v18 = vadd.f32 %v607_v10, %v606_v62  ;;  %v669_v12 = vadd.f32 %v668_v14, %v667_v0  ;;  %v653_v23 = vadd.f32 %v652_v31, %v651_v19  ;;  %v954_v62 = vld [vmem:[%s1761_s4] ss:$0 sm:$0xff] }
 0x16a   : > { %v692_v20 = vsel %vm691_vm2, %v628_v13, %v619_v11  ;;  %v634_v24 = vrot.slane %v633_v15, 2  ;;  %v639_v26 = vadd.f32 %v638_v17, %v592_v16  ;;  %v662_v39 = vadd.f32 %v661_v32, %v660_v21 }
 0x16b   : > { %v675_v27 = vadd.f32 %v674_v18, %v608_v4  ;;  %v670_v36 = vrot.slane %v669_v12, 2  ;;  %v654_v46 = vrot.slane %v653_v23, 1 }
 0x16c   : > { %v635_v29 = vadd.f32 %v634_v24, %v633_v15  ;;  %v640_v30 = vadd.f32 %v639_v26, %v593_v22  ;;  %v663_v47 = vrot.slane %v662_v39, 1 }
 0x16d   : > { %v676_v28 = vadd.f32 %v675_v27, %v609_v25  ;;  %v671_v43 = vadd.f32 %v670_v36, %v669_v12  ;;  %v655_v52 = vadd.f32 %v654_v46, %v653_v23 }
 0x16e   : > { %v636_v33 = vrot.slane %v635_v29, 1  ;;  %v641_v34 = vrot.slane %v640_v30, 4  ;;  %v664_v54 = vadd.f32 %v663_v47, %v662_v39 }
 0x16f   : > { %v677_v35 = vrot.slane %v676_v28, 4  ;;  %v672_v49 = vrot.slane %v671_v43, 1 }
 0x170   : > { %v637_v53 = vadd.f32 %v636_v33, %v635_v29  ;;  %v642_v37 = vadd.f32 %v641_v34, %v640_v30 }
 0x171   : > { %v678_v38 = vadd.f32 %v677_v35, %v676_v28  ;;  %v673_v56 = vadd.f32 %v672_v49, %v671_v43 }
 0x172   : > { %v643_v40 = vrot.slane %v642_v37, 2  ;;  %v694_v42 = vsel %vm693_vm3, %v637_v53, %v692_v20 }
 0x173   : > { %v679_v41 = vrot.slane %v678_v38, 2 }
 0x174   : > { %v644_v44 = vadd.f32 %v643_v40, %v642_v37 }
 0x175   : > { %v680_v45 = vadd.f32 %v679_v41, %v678_v38 }
 0x176   : > { %v645_v48 = vrot.slane %v644_v44, 1 }
 0x177   : > { %v681_v51 = vrot.slane %v680_v45, 1 }
 0x178   : > { %v646_v50 = vadd.f32 %v645_v48, %v644_v44 }
 0x179   : > { %v682_v58 = vadd.f32 %v681_v51, %v680_v45 }
 0x17a   : > { %v696_v55 = vsel %vm695_vm4, %v646_v50, %v694_v42 }
 0x17b   : > { %v698_v57 = vsel %vm697_vm5, %v655_v52, %v696_v55 }
 0x17c   : > { %v700_v59 = vsel %vm699_vm6, %v664_v54, %v698_v57 }
 0x17d   : > { %v702_v60 = vsel %vm701_vm7, %v673_v56, %v700_v59 }
 0x17e   : > { %v704_v61 = vsel %vm703_vm8, %v682_v58, %v702_v60 }
 0x17f   : > { %1065 = vmatmul.mubr.f32.vlgmr.msra.gmra.mrb[16].mxu1 %v704_v61 }
 0x252   : > { %v801_v63 = vpop.f32.mrb[16].mxu1 }
 0x253   : > { %v802_v0 = vadd.f32 %v954_v62, %v801_v63  ;;  %v1066_v1 = vpop.f32.mrb[17].mxu1 }
 0x255   : > { %805 = vst [vmem:[%s288_s11] sm:$0xff] %v802_v0 }
 0x256   : > { %1286 = shalt.err (!%p1283_p11)
}
 0x257   : > { %s1287_s24 = scalar_lea.hbm %s1708_s14, 128  ;;  %s1291_s25 = scalar_lea.hbm %s1762_s5, 256 }
 0x258   : > { %p1288_p0 = scmp.ne.s32.totalorder %s1708_s14, %s1287_s24  ;;  %p1292_p6 = scmp.lt.u32.totalorder %s1708_s14, %s1762_s5 }
 0x259   : > { %p1293_p7 = scmp.lt.u32.totalorder %s1291_s25, %s1287_s24  ;;  %p1295_p8 = scmp.lt.u32.totalorder %s1287_s24, %s1708_s14 }
 0x25a   : > { %p1289_p4 = pnand %p1288_p0, %p1779_p12 }
 0x25b   : > { %p1294_p2 = por %p1293_p7, %p1292_p6 }
 0x25c   : > { %p1290_p13 = pneg %p1289_p4 }
 0x25d   : > { %p1296_p1 = por %p1295_p8, %p1294_p2 }
 0x25f   : > { %p1297_p10 = pnand %p1296_p1, %p1290_p13 }
 0x261   : > { %1300 = shalt.err (!%p1297_p10)
}
 0x262   : > { %1105 = dma.vmem_to_hbm [thread:$0]  (%p1779_p12), %s1710_s13, 128, %s1708_s14, %s807_s27  }
 0x263 PF: > { %s832_s11 = sand.u32 1, %s1339_s18   ;;  %p1780_p3 = scmp.ne.s32.totalorder %s1771_s29, 0 }
 0x264   : > { %p1781_p5 = scmp.ge.s32.totalorder %s1359_s23, 2  ;;  %s833_s16 = scalar_lea.sflag [#allocation5], %s832_s11 }
 0x266   : > { %p1119_p9 = pnand %p1781_p5, %p1780_p3 }
 0x268   : > { %1334 = dma.done.wait (!%p1119_p9), %s833_s16, 128  }
 0x269   : > { %1336 = vsyncadd (!%p1119_p9), %s833_s16, 4294967168  ;;  %s22_s23 = sadd.s32 1, %s1359_s23   ;;  %s1782_s18 = smov %s1343_s19 }
 0x26a   : > { %p19_p11 = scmp.ge.s32.totalorder %s22_s23, 4   ;;  %s1783_s19 = smov %s1347_s20 }
 0x26b   : > { %s1784_s20 = smov %s1547_s17  ;;  %s1785_s21 = smov %s1355_s22 }
 0x26c   : > { %s1786_s22 = smov %s1788_s12  ;;  %21 = sbr.rel (!%p19_p11) target bundleno = 7 (0x7), region = 101 }
 0x273   :  { %838 = vsyncpa [#allocation4], 1 }
 0x274   :  { %840 = vsyncpa [#allocation4 + $0x1], 1 }
 0x275   :  { %841 = vsyncpa [#allocation7], 1 }
 0x276   :  { %842 = vsyncpa [#allocation5], 1 }
 0x277   :  { %844 = vsyncpa [#allocation5 + $0x1], 1 }

</bundles_post_ra>
